<compile_context>
chip_gen: v5e
topology: v5e:2x2
jax: 0.10.0
libtpu: 0.0.40
codegen_flags: <defaults>
</compile_context>

<pallas_src>
import math
import functools
import numpy as np

import jax
import jax.numpy as jnp
from jax.experimental import pallas as pl
from jax.experimental.pallas import tpu as pltpu

# ----------------------------- config (small) -------------------------------
VOCAB = 512        # small stand-in for 50257
BLOCK_SIZE = 16    # max positions (>= T used below)
N_LAYER = 2
N_HEAD = 4
N_EMBD = 32
LN_EPS = 1e-5

FP = jnp.float32       # residual stream / LN / softmax precision
WP = jnp.bfloat16      # stored weight / MXU operand precision


def _ln(x, w, b):
    """Row LayerNorm in f32. x: (M, C); w, b: (1, C)."""
    mean = jnp.mean(x, axis=-1, keepdims=True)
    xc = x - mean
    var = jnp.mean(xc * xc, axis=-1, keepdims=True)
    return xc * jax.lax.rsqrt(var + LN_EPS) * w + b


# ------------------------------- kernels ------------------------------------
def gpt_body_kernel(x_ref,
                    ln1w_ref, ln1b_ref, wqkv_ref, bqkv_ref,
                    wproj_ref, bproj_ref, ln2w_ref, ln2b_ref,
                    wfc_ref, bfc_ref, wmlp_ref, bmlp_ref,
                    lnfw_ref, lnfb_ref,
                    o_ref, *, T, H, D, L):
    """All transformer blocks + final LN_f for ONE batch element.

    x_ref: (T, C) f32 (tok+pos).  Per-layer weights are stacked on a leading
    layer axis and indexed with a static Python int (loop unrolls at trace
    time).  o_ref: (1, 1, C) — LN_f'd hidden state of the LAST position only
    (LN_f hoisted out of the lm_head kernel).
    """
    C = H * D
    x = x_ref[...]                                             # (T, C) f32
    scale = 1.0 / math.sqrt(D)
    row = jax.lax.broadcasted_iota(jnp.int32, (T, T), 0)
    col = jax.lax.broadcasted_iota(jnp.int32, (T, T), 1)
    causal = (col <= row)[None]                                # (1, T, T); bcast over heads

    for l in range(L):                                         # static unroll over layers
        # ---- LN1 + QKV projection (bf16 operands, f32 accumulate) ----
        h1 = _ln(x, ln1w_ref[l], ln1b_ref[l])
        qkv = jnp.dot(h1.astype(WP), wqkv_ref[l],
                      preferred_element_type=jnp.float32) + bqkv_ref[l]   # (T, 3C)

        # ---- causal self-attention: heads batched into one contraction ----
        # Stack per-head lane slices into a leading batch dim (H, T, D); the
        # score and PV matmuls are then single batched dot_generals instead of
        # H tiny matmuls + masked scratch stores.
        qh = jnp.stack([qkv[:, h * D:(h + 1) * D] for h in range(H)], axis=0)
        kh = jnp.stack([qkv[:, C + h * D:C + (h + 1) * D] for h in range(H)], axis=0)
        vh = jnp.stack([qkv[:, 2 * C + h * D:2 * C + (h + 1) * D] for h in range(H)], axis=0)
        qh = (qh * scale).astype(WP)                           # scale folded into q
        kh = kh.astype(WP)
        vh = vh.astype(WP)

        s = jax.lax.dot_general(qh, kh, (((2,), (2,)), ((0,), (0,))),
                                preferred_element_type=jnp.float32)       # (H, T, T)
        s = jnp.where(causal, s, -1e30)
        s = s - jnp.max(s, axis=-1, keepdims=True)
        p = jnp.exp(s)
        p = p * pl.reciprocal(jnp.sum(p, axis=-1, keepdims=True), approx=True)
        y = jax.lax.dot_general(p.astype(WP), vh, (((2,), (1,)), ((0,), (0,))),
                                preferred_element_type=jnp.float32)       # (H, T, D)
        # Re-assemble the lane-dense (T, C) activation (head-major columns).
        y2d = jnp.concatenate([y[h] for h in range(H)], axis=-1)          # (T, C)

        attn = jnp.dot(y2d.astype(WP), wproj_ref[l],
                       preferred_element_type=jnp.float32) + bproj_ref[l]
        x = x + attn                                           # residual 1

        # ---- LN2 + MLP (fc + exact erf GELU + proj), residual 2 ----
        h2 = _ln(x, ln2w_ref[l], ln2b_ref[l])
        f = jnp.dot(h2.astype(WP), wfc_ref[l],
                    preferred_element_type=jnp.float32) + bfc_ref[l]
        # Exact (erf) GELU for torch.nn.GELU() parity. (tanh-approx would land
        # the transcendental on the EUP slot — cheaper, esp. on v5e's VALU —
        # but breaks exact parity, so we keep erf.)
        f = 0.5 * f * (1.0 + jax.lax.erf(f * (1.0 / math.sqrt(2.0))))
        m = jnp.dot(f.astype(WP), wmlp_ref[l],
                    preferred_element_type=jnp.float32) + bmlp_ref[l]
        x = x + m

    # ---- final LN_f, last position only (hoisted out of the lm_head) ----
    x_last = x[T - 1:T, :]                                     # (1, C)
    o_ref[...] = _ln(x_last, lnfw_ref[...], lnfb_ref[...]).reshape(o_ref.shape)


def lm_head_kernel(x_ref, wte_ref, o_ref):
    """Weight-tied lm_head on one vocab tile.

    x_ref: (B, 1, C) LN_f'd hidden (LN NOT recomputed per tile); wte tile:
    (TV, C) bf16; o_ref: (B, 1, TV) f32 logits (lane-dense, TV multiple of 128).
    """
    B, _, C = x_ref.shape
    h = x_ref[...].reshape(B, C).astype(WP)
    # x @ W^T via contraction on last dims of both (no HBM transpose of wte)
    logits = jax.lax.dot_general(h, wte_ref[...],
                                 dimension_numbers=(((1,), (1,)), ((), ())),
                                 preferred_element_type=jnp.float32)
    o_ref[...] = logits.reshape(o_ref.shape)


# --------------------------- pallas_call wrappers ----------------------------
def _resident_spec(arr):
    """Full-array VMEM block that stays resident across the (parallel) grid."""
    nd = arr.ndim
    return pl.BlockSpec(arr.shape, lambda b, _nd=nd: (0,) * _nd)


def gpt_body(x2d, p, *, B, T):
    """Fused embeddings->blocks->LN_f body, gridded (parallel) over the batch."""
    M, C = x2d.shape
    assert M == B * T
    weights = (p["ln1_w"], p["ln1_b"], p["attn_w"], p["attn_b"],
               p["attn_proj_w"], p["attn_proj_b"], p["ln2_w"], p["ln2_b"],
               p["fc_w"], p["fc_b"], p["mlp_proj_w"], p["mlp_proj_b"],
               p["lnf_w"], p["lnf_b"])
    kern = functools.partial(gpt_body_kernel, T=T, H=N_HEAD, D=C // N_HEAD,
                             L=N_LAYER)
    return pl.pallas_call(
        kern,
        out_shape=jax.ShapeDtypeStruct((B, 1, C), FP),
        grid=(B,),                                             # batch-parallel (v7x megacore)
        in_specs=[pl.BlockSpec((T, C), lambda b: (b, 0))]
                 + [_resident_spec(w) for w in weights],
        out_specs=pl.BlockSpec((1, 1, C), lambda b: (b, 0, 0)),
        compiler_params=pltpu.CompilerParams(dimension_semantics=("parallel",)),
    )(x2d, *weights)


def lm_head(h_last, wte, *, tv=256):
    """Tied lm_head over 256-wide vocab tiles (full MXU N-width on v6e/v7x)."""
    B, _, C = h_last.shape
    V = wte.shape[0]
    assert V % tv == 0
    return pl.pallas_call(
        lm_head_kernel,
        out_shape=jax.ShapeDtypeStruct((B, 1, V), FP),
        grid=(V // tv,),
        in_specs=[
            pl.BlockSpec((B, 1, C), lambda j: (0, 0, 0)),
            pl.BlockSpec((tv, C), lambda j: (j, 0)),
        ],
        out_specs=pl.BlockSpec((B, 1, tv), lambda j: (0, 0, j)),
        compiler_params=pltpu.CompilerParams(dimension_semantics=("parallel",)),
    )(h_last, wte)


# ----------------------------- parameter init --------------------------------
def init_params(key):
    std = 0.02
    proj_std = 0.02 / math.sqrt(2 * N_LAYER)
    C = N_EMBD
    L = N_LAYER
    keys = jax.random.split(key, 6)
    p = {}
    p["wte"] = (jax.random.normal(keys[0], (VOCAB, C)) * std).astype(WP)   # tied lm_head
    p["wpe"] = (jax.random.normal(keys[1], (BLOCK_SIZE, C)) * std).astype(FP)
    # Per-layer weights stacked on a leading layer axis (one fused body kernel).
    p["ln1_w"] = jnp.ones((L, 1, C), FP)
    p["ln1_b"] = jnp.zeros((L, 1, C), FP)
    p["attn_w"] = (jax.random.normal(keys[2], (L, C, 3 * C)) * std).astype(WP)
    p["attn_b"] = jnp.zeros((L, 1, 3 * C), FP)
    p["attn_proj_w"] = (jax.random.normal(keys[3], (L, C, C)) * proj_std).astype(WP)
    p["attn_proj_b"] = jnp.zeros((L, 1, C), FP)
    p["ln2_w"] = jnp.ones((L, 1, C), FP)
    p["ln2_b"] = jnp.zeros((L, 1, C), FP)
    p["fc_w"] = (jax.random.normal(keys[4], (L, C, 4 * C)) * std).astype(WP)
    p["fc_b"] = jnp.zeros((L, 1, 4 * C), FP)
    p["mlp_proj_w"] = (jax.random.normal(keys[5], (L, 4 * C, C)) * proj_std).astype(WP)
    p["mlp_proj_b"] = jnp.zeros((L, 1, C), FP)
    p["lnf_w"] = jnp.ones((1, C), FP)
    p["lnf_b"] = jnp.zeros((1, C), FP)
    return p


# ------------------------------ GPT forward ----------------------------------
def gpt_forward(params, idx):
    """Inference path (targets=None): logits for the last position, (B, 1, VOCAB)."""
    B, T = idx.shape
    C = N_EMBD
    tok = jnp.take(params["wte"], idx, axis=0).astype(FP)      # embedding gather (XLA glue)
    pos = params["wpe"][:T]                                     # (T, C)
    x2 = (tok + pos).reshape(B * T, C)                          # dropout (eval) = identity
    h_last = gpt_body(x2, params, B=B, T=T)                     # (B, 1, C), LN_f applied
    return lm_head(h_last, params["wte"])                       # (B, 1, VOCAB)


# --------------------------- plain-JAX reference ------------------------------
def _ref_ln(x, w, b):
    m = jnp.mean(x, axis=-1, keepdims=True)
    v = jnp.mean((x - m) ** 2, axis=-1, keepdims=True)
    return (x - m) * jax.lax.rsqrt(v + LN_EPS) * w + b


def _ref_gelu(x):
    return 0.5 * x * (1.0 + jax.lax.erf(x / math.sqrt(2.0)))


def gpt_forward_ref(params, idx):
    B, T = idx.shape
    C = N_EMBD
    D = C // N_HEAD
    f32 = lambda a: a.astype(jnp.float32)
    x = jnp.take(f32(params["wte"]), idx, axis=0) + params["wpe"][:T]
    mask = jnp.tril(jnp.ones((T, T), bool))
    for l in range(N_LAYER):
        h = _ref_ln(x, params["ln1_w"][l], params["ln1_b"][l])
        qkv = h @ f32(params["attn_w"][l]) + params["attn_b"][l]
        q, k, v = jnp.split(qkv, 3, axis=-1)
        q = q.reshape(B, T, N_HEAD, D).transpose(0, 2, 1, 3)
        k = k.reshape(B, T, N_HEAD, D).transpose(0, 2, 1, 3)
        v = v.reshape(B, T, N_HEAD, D).transpose(0, 2, 1, 3)
        s = jnp.einsum("bhqd,bhkd->bhqk", q, k) / math.sqrt(D)
        s = jnp.where(mask[None, None], s, -jnp.inf)
        p = jax.nn.softmax(s, axis=-1)
        y = jnp.einsum("bhqk,bhkd->bhqd", p, v)
        y = y.transpose(0, 2, 1, 3).reshape(B, T, C)
        x = x + (y @ f32(params["attn_proj_w"][l]) + params["attn_proj_b"][l])
        h = _ref_ln(x, params["ln2_w"][l], params["ln2_b"][l])
        h = _ref_gelu(h @ f32(params["fc_w"][l]) + params["fc_b"][l])
        x = x + (h @ f32(params["mlp_proj_w"][l]) + params["mlp_proj_b"][l])
    x = _ref_ln(x, params["lnf_w"], params["lnf_b"])
    return x[:, -1:, :] @ f32(params["wte"]).T


# ----------------------------------- main -------------------------------------
if __name__ == "__main__":
    key = jax.random.PRNGKey(0)
    pkey, ikey = jax.random.split(key)
    params = init_params(pkey)

    B, T = 2, 8
    idx = jax.random.randint(ikey, (B, T), 0, VOCAB, dtype=jnp.int32)

    gpt = jax.jit(gpt_forward)
    logits = jax.block_until_ready(gpt(params, idx))

    ref = gpt_forward_ref(params, idx)
    assert logits.shape == (B, 1, VOCAB), logits.shape
    # bf16 matmul operands (f32 accumulation) + approx softmax reciprocal vs f32
    # reference -> slightly looser tolerance.
    np.testing.assert_allclose(np.asarray(logits), np.asarray(ref), rtol=2e-2, atol=2e-2)

    print("KERNEL_OK")
</pallas_src>

<mosaic_0001>
module attributes {stable_mosaic.version = 11 : i64} {
  func.func @lm_head_kernel(%arg0: i32, %arg1: memref<2x1x32xf32, #tpu.memory_space<vmem>>, %arg2: memref<256x32xbf16, #tpu.memory_space<vmem>>, %arg3: memref<2x1x256xf32, #tpu.memory_space<vmem>>) attributes {dimension_semantics = [#tpu.dimension_semantics<parallel>], iteration_bounds = array<i64: 2>, scalar_prefetch = 0 : i64, scratch_operands = 0 : i64, tpu.core_type = #tpu.core_type<tc>, window_params = [{pipeline_mode = #tpu.pipeline_mode<synchronous>, transform_indices = @transform_0, window_bounds = array<i64: 2, 1, 32>}, {transform_indices = @transform_1, window_bounds = array<i64: 256, 32>}, {transform_indices = @transform_2, window_bounds = array<i64: 2, 1, 256>}]} {
    %c0 = arith.constant 0 : index
    %c0_0 = arith.constant 0 : index
    %c0_1 = arith.constant 0 : index
    %0 = vector.load %arg1[%c0, %c0_0, %c0_1] : memref<2x1x32xf32, #tpu.memory_space<vmem>>, vector<2x1x32xf32>
    %1 = vector.shape_cast %0 : vector<2x1x32xf32> to vector<2x32xf32>
    %2 = arith.truncf %1 : vector<2x32xf32> to vector<2x32xbf16>
    %c0_2 = arith.constant 0 : index
    %c0_3 = arith.constant 0 : index
    %3 = vector.load %arg2[%c0_2, %c0_3] : memref<256x32xbf16, #tpu.memory_space<vmem>>, vector<256x32xbf16>
    %cst = arith.constant dense<0.000000e+00> : vector<2x256xf32>
    %4 = tpu.matmul %2, %3, %cst {dimension_numbers = #tpu.dot_dimension_numbers<[1], [1], [0], [0], [0, 0, 1, 0], [], []>} : vector<2x32xbf16>, vector<256x32xbf16>, vector<2x256xf32> -> vector<2x256xf32>
    %5 = vector.shape_cast %4 : vector<2x256xf32> to vector<2x1x256xf32>
    %c0_4 = arith.constant 0 : index
    %c0_5 = arith.constant 0 : index
    %c0_6 = arith.constant 0 : index
    %6 = vector.load %arg3[%c0_4, %c0_5, %c0_6] : memref<2x1x256xf32, #tpu.memory_space<vmem>>, vector<2x1x256xf32>
    tpu.vector_store %arg3[%c0_4, %c0_5, %c0_6], %5 {strides = array<i32>} : memref<2x1x256xf32, #tpu.memory_space<vmem>>, vector<2x1x256xf32>,
    return
  }
  func.func @transform_0(%arg0: i32) -> (i32, i32, i32) {
    %c0_i32 = arith.constant 0 : i32
    %c0_i32_0 = arith.constant 0 : i32
    %c0_i32_1 = arith.constant 0 : i32
    %c0_i32_2 = arith.constant 0 : i32
    return %c0_i32, %c0_i32_0, %c0_i32_1 : i32, i32, i32
  }
  func.func @transform_1(%arg0: i32) -> (i32, i32) {
    %c0_i32 = arith.constant 0 : i32
    %c0_i32_0 = arith.constant 0 : i32
    return %arg0, %c0_i32 : i32, i32
  }
  func.func @transform_2(%arg0: i32) -> (i32, i32, i32) {
    %c0_i32 = arith.constant 0 : i32
    %c0_i32_0 = arith.constant 0 : i32
    %c0_i32_1 = arith.constant 0 : i32
    return %c0_i32, %c0_i32_0, %arg0 : i32, i32, i32
  }
}

module attributes {stable_mosaic.version = 11 : i64} {
  func.func @gpt_body_kernel(%arg0: i32, %arg1: memref<8x32xf32, #tpu.memory_space<vmem>>, %arg2: memref<2x1x32xf32, #tpu.memory_space<vmem>>, %arg3: memref<2x1x32xf32, #tpu.memory_space<vmem>>, %arg4: memref<2x32x96xbf16, #tpu.memory_space<vmem>>, %arg5: memref<2x1x96xf32, #tpu.memory_space<vmem>>, %arg6: memref<2x32x32xbf16, #tpu.memory_space<vmem>>, %arg7: memref<2x1x32xf32, #tpu.memory_space<vmem>>, %arg8: memref<2x1x32xf32, #tpu.memory_space<vmem>>, %arg9: memref<2x1x32xf32, #tpu.memory_space<vmem>>, %arg10: memref<2x32x128xbf16, #tpu.memory_space<vmem>>, %arg11: memref<2x1x128xf32, #tpu.memory_space<vmem>>, %arg12: memref<2x128x32xbf16, #tpu.memory_space<vmem>>, %arg13: memref<2x1x32xf32, #tpu.memory_space<vmem>>, %arg14: memref<1x32xf32, #tpu.memory_space<vmem>>, %arg15: memref<1x32xf32, #tpu.memory_space<vmem>>, %arg16: memref<1x1x32xf32, #tpu.memory_space<vmem>>) attributes {dimension_semantics = [#tpu.dimension_semantics<parallel>], iteration_bounds = array<i64: 2>, scalar_prefetch = 0 : i64, scratch_operands = 0 : i64, tpu.core_type = #tpu.core_type<tc>, window_params = [{transform_indices = @transform_0, window_bounds = array<i64: 8, 32>}, {pipeline_mode = #tpu.pipeline_mode<synchronous>, transform_indices = @transform_1, window_bounds = array<i64: 2, 1, 32>}, {pipeline_mode = #tpu.pipeline_mode<synchronous>, transform_indices = @transform_2, window_bounds = array<i64: 2, 1, 32>}, {pipeline_mode = #tpu.pipeline_mode<synchronous>, transform_indices = @transform_3, window_bounds = array<i64: 2, 32, 96>}, {pipeline_mode = #tpu.pipeline_mode<synchronous>, transform_indices = @transform_4, window_bounds = array<i64: 2, 1, 96>}, {pipeline_mode = #tpu.pipeline_mode<synchronous>, transform_indices = @transform_5, window_bounds = array<i64: 2, 32, 32>}, {pipeline_mode = #tpu.pipeline_mode<synchronous>, transform_indices = @transform_6, window_bounds = array<i64: 2, 1, 32>}, {pipeline_mode = #tpu.pipeline_mode<synchronous>, transform_indices = @transform_7, window_bounds = array<i64: 2, 1, 32>}, {pipeline_mode = #tpu.pipeline_mode<synchronous>, transform_indices = @transform_8, window_bounds = array<i64: 2, 1, 32>}, {pipeline_mode = #tpu.pipeline_mode<synchronous>, transform_indices = @transform_9, window_bounds = array<i64: 2, 32, 128>}, {pipeline_mode = #tpu.pipeline_mode<synchronous>, transform_indices = @transform_10, window_bounds = array<i64: 2, 1, 128>}, {pipeline_mode = #tpu.pipeline_mode<synchronous>, transform_indices = @transform_11, window_bounds = array<i64: 2, 128, 32>}, {pipeline_mode = #tpu.pipeline_mode<synchronous>, transform_indices = @transform_12, window_bounds = array<i64: 2, 1, 32>}, {pipeline_mode = #tpu.pipeline_mode<synchronous>, transform_indices = @transform_13, window_bounds = array<i64: 1, 32>}, {pipeline_mode = #tpu.pipeline_mode<synchronous>, transform_indices = @transform_14, window_bounds = array<i64: 1, 32>}, {transform_indices = @transform_15, window_bounds = array<i64: 1, 1, 32>}]} {
    %c0 = arith.constant 0 : index
    %c0_0 = arith.constant 0 : index
    %0 = vector.load %arg1[%c0, %c0_0] : memref<8x32xf32, #tpu.memory_space<vmem>>, vector<8x32xf32>
    %1 = tpu.iota {dimensions = array<i32: 0>} : vector<8x8xi32>
    %2 = tpu.iota {dimensions = array<i32: 1>} : vector<8x8xi32>
    %3 = arith.cmpi sle, %2, %1 : vector<8x8xi32>
    %4 = vector.shape_cast %3 : vector<8x8xi1> to vector<1x8x8xi1>
    %c0_1 = arith.constant 0 : index
    %c0_2 = arith.constant 0 : index
    %c0_3 = arith.constant 0 : index
    %5 = vector.load %arg2[%c0_1, %c0_2, %c0_3] : memref<2x1x32xf32, #tpu.memory_space<vmem>>, vector<1x1x32xf32>
    %6 = vector.shape_cast %5 : vector<1x1x32xf32> to vector<1x32xf32>
    %c0_4 = arith.constant 0 : index
    %c0_5 = arith.constant 0 : index
    %c0_6 = arith.constant 0 : index
    %7 = vector.load %arg3[%c0_4, %c0_5, %c0_6] : memref<2x1x32xf32, #tpu.memory_space<vmem>>, vector<1x1x32xf32>
    %8 = vector.shape_cast %7 : vector<1x1x32xf32> to vector<1x32xf32>
    %cst = arith.constant dense<0.000000e+00> : vector<8xf32>
    %9 = vector.multi_reduction <add>, %0, %cst [1] : vector<8x32xf32> to vector<8xf32>
    %10 = vector.shape_cast %9 : vector<8xf32> to vector<8x1xf32>
    %cst_7 = arith.constant 3.200000e+01 : f32
    %11 = vector.broadcast %cst_7 : f32 to vector<8x1xf32>
    %12 = arith.divf %10, %11 : vector<8x1xf32>
    %13 = vector.broadcast %12 : vector<8x1xf32> to vector<8x32xf32>
    %14 = arith.subf %0, %13 : vector<8x32xf32>
    %15 = arith.mulf %14, %14 : vector<8x32xf32>
    %cst_8 = arith.constant dense<0.000000e+00> : vector<8xf32>
    %16 = vector.multi_reduction <add>, %15, %cst_8 [1] : vector<8x32xf32> to vector<8xf32>
    %17 = vector.shape_cast %16 : vector<8xf32> to vector<8x1xf32>
    %cst_9 = arith.constant 3.200000e+01 : f32
    %18 = vector.broadcast %cst_9 : f32 to vector<8x1xf32>
    %19 = arith.divf %17, %18 : vector<8x1xf32>
    %cst_10 = arith.constant 9.99999974E-6 : f32
    %20 = vector.broadcast %cst_10 : f32 to vector<8x1xf32>
    %21 = arith.addf %19, %20 : vector<8x1xf32>
    %22 = math.rsqrt %21 : vector<8x1xf32>
    %23 = vector.broadcast %22 : vector<8x1xf32> to vector<8x32xf32>
    %24 = arith.mulf %14, %23 : vector<8x32xf32>
    %25 = vector.broadcast %6 : vector<1x32xf32> to vector<8x32xf32>
    %26 = arith.mulf %24, %25 : vector<8x32xf32>
    %27 = vector.broadcast %8 : vector<1x32xf32> to vector<8x32xf32>
    %28 = arith.addf %26, %27 : vector<8x32xf32>
    %29 = arith.truncf %28 : vector<8x32xf32> to vector<8x32xbf16>
    %c0_11 = arith.constant 0 : index
    %c0_12 = arith.constant 0 : index
    %c0_13 = arith.constant 0 : index
    %30 = vector.load %arg4[%c0_11, %c0_12, %c0_13] : memref<2x32x96xbf16, #tpu.memory_space<vmem>>, vector<1x32x96xbf16>
    %31 = vector.shape_cast %30 : vector<1x32x96xbf16> to vector<32x96xbf16>
    %cst_14 = arith.constant dense<0.000000e+00> : vector<8x96xf32>
    %32 = tpu.matmul %29, %31, %cst_14 {dimension_numbers = #tpu.dot_dimension_numbers<[1], [0], [0], [1], [0, 0, 1, 1], [], []>} : vector<8x32xbf16>, vector<32x96xbf16>, vector<8x96xf32> -> vector<8x96xf32>
    %c0_15 = arith.constant 0 : index
    %c0_16 = arith.constant 0 : index
    %c0_17 = arith.constant 0 : index
    %33 = vector.load %arg5[%c0_15, %c0_16, %c0_17] : memref<2x1x96xf32, #tpu.memory_space<vmem>>, vector<1x1x96xf32>
    %34 = vector.shape_cast %33 : vector<1x1x96xf32> to vector<1x96xf32>
    %35 = vector.broadcast %34 : vector<1x96xf32> to vector<8x96xf32>
    %36 = arith.addf %32, %35 : vector<8x96xf32>
    %37 = vector.extract_strided_slice %36 {offsets = [0, 0], sizes = [8, 8], strides = [1, 1]} : vector<8x96xf32> to vector<8x8xf32>
    %38 = vector.extract_strided_slice %36 {offsets = [0, 8], sizes = [8, 8], strides = [1, 1]} : vector<8x96xf32> to vector<8x8xf32>
    %39 = vector.extract_strided_slice %36 {offsets = [0, 16], sizes = [8, 8], strides = [1, 1]} : vector<8x96xf32> to vector<8x8xf32>
    %40 = vector.extract_strided_slice %36 {offsets = [0, 24], sizes = [8, 8], strides = [1, 1]} : vector<8x96xf32> to vector<8x8xf32>
    %41 = vector.shape_cast %37 : vector<8x8xf32> to vector<1x8x8xf32>
    %42 = vector.shape_cast %38 : vector<8x8xf32> to vector<1x8x8xf32>
    %43 = vector.shape_cast %39 : vector<8x8xf32> to vector<1x8x8xf32>
    %44 = vector.shape_cast %40 : vector<8x8xf32> to vector<1x8x8xf32>
    %45 = tpu.concatenate %41, %42, %43, %44 in 0 : vector<1x8x8xf32>, vector<1x8x8xf32>, vector<1x8x8xf32>, vector<1x8x8xf32> -> vector<4x8x8xf32>
    %46 = vector.extract_strided_slice %36 {offsets = [0, 32], sizes = [8, 8], strides = [1, 1]} : vector<8x96xf32> to vector<8x8xf32>
    %47 = vector.extract_strided_slice %36 {offsets = [0, 40], sizes = [8, 8], strides = [1, 1]} : vector<8x96xf32> to vector<8x8xf32>
    %48 = vector.extract_strided_slice %36 {offsets = [0, 48], sizes = [8, 8], strides = [1, 1]} : vector<8x96xf32> to vector<8x8xf32>
    %49 = vector.extract_strided_slice %36 {offsets = [0, 56], sizes = [8, 8], strides = [1, 1]} : vector<8x96xf32> to vector<8x8xf32>
    %50 = vector.shape_cast %46 : vector<8x8xf32> to vector<1x8x8xf32>
    %51 = vector.shape_cast %47 : vector<8x8xf32> to vector<1x8x8xf32>
    %52 = vector.shape_cast %48 : vector<8x8xf32> to vector<1x8x8xf32>
    %53 = vector.shape_cast %49 : vector<8x8xf32> to vector<1x8x8xf32>
    %54 = tpu.concatenate %50, %51, %52, %53 in 0 : vector<1x8x8xf32>, vector<1x8x8xf32>, vector<1x8x8xf32>, vector<1x8x8xf32> -> vector<4x8x8xf32>
    %55 = vector.extract_strided_slice %36 {offsets = [0, 64], sizes = [8, 8], strides = [1, 1]} : vector<8x96xf32> to vector<8x8xf32>
    %56 = vector.extract_strided_slice %36 {offsets = [0, 72], sizes = [8, 8], strides = [1, 1]} : vector<8x96xf32> to vector<8x8xf32>
    %57 = vector.extract_strided_slice %36 {offsets = [0, 80], sizes = [8, 8], strides = [1, 1]} : vector<8x96xf32> to vector<8x8xf32>
    %58 = vector.extract_strided_slice %36 {offsets = [0, 88], sizes = [8, 8], strides = [1, 1]} : vector<8x96xf32> to vector<8x8xf32>
    %59 = vector.shape_cast %55 : vector<8x8xf32> to vector<1x8x8xf32>
    %60 = vector.shape_cast %56 : vector<8x8xf32> to vector<1x8x8xf32>
    %61 = vector.shape_cast %57 : vector<8x8xf32> to vector<1x8x8xf32>
    %62 = vector.shape_cast %58 : vector<8x8xf32> to vector<1x8x8xf32>
    %63 = tpu.concatenate %59, %60, %61, %62 in 0 : vector<1x8x8xf32>, vector<1x8x8xf32>, vector<1x8x8xf32>, vector<1x8x8xf32> -> vector<4x8x8xf32>
    %cst_18 = arith.constant 0.353553385 : f32
    %64 = vector.broadcast %cst_18 : f32 to vector<4x8x8xf32>
    %65 = arith.mulf %45, %64 : vector<4x8x8xf32>
    %66 = arith.truncf %65 : vector<4x8x8xf32> to vector<4x8x8xbf16>
    %67 = arith.truncf %54 : vector<4x8x8xf32> to vector<4x8x8xbf16>
    %68 = arith.truncf %63 : vector<4x8x8xf32> to vector<4x8x8xbf16>
    %cst_19 = arith.constant dense<0.000000e+00> : vector<4x8x8xf32>
    %69 = tpu.matmul %66, %67, %cst_19 {dimension_numbers = #tpu.dot_dimension_numbers<[2], [2], [1], [1], [0, 0, 0, 1, 1, 1], [0], [0]>} : vector<4x8x8xbf16>, vector<4x8x8xbf16>, vector<4x8x8xf32> -> vector<4x8x8xf32>
    %cst_20 = arith.constant -1.000000e+30 : f32
    %70 = vector.shape_cast %4 : vector<1x8x8xi1> to vector<1x8x8xi1>
    %71 = vector.broadcast %70 : vector<1x8x8xi1> to vector<4x8x8xi1>
    %72 = vector.broadcast %cst_20 : f32 to vector<4x8x8xf32>
    %73 = arith.select %71, %69, %72 : vector<4x8x8xi1>, vector<4x8x8xf32>
    %cst_21 = arith.constant dense<0xFF800000> : vector<4x8xf32>
    %74 = vector.multi_reduction <maximumf>, %73, %cst_21 [2] : vector<4x8x8xf32> to vector<4x8xf32>
    %75 = vector.shape_cast %74 : vector<4x8xf32> to vector<4x8x1xf32>
    %76 = vector.broadcast %75 : vector<4x8x1xf32> to vector<4x8x8xf32>
    %77 = arith.subf %73, %76 : vector<4x8x8xf32>
    %78 = math.exp %77 : vector<4x8x8xf32>
    %cst_22 = arith.constant dense<0.000000e+00> : vector<4x8xf32>
    %79 = vector.multi_reduction <add>, %78, %cst_22 [2] : vector<4x8x8xf32> to vector<4x8xf32>
    %80 = vector.shape_cast %79 : vector<4x8xf32> to vector<4x8x1xf32>
    %81 = tpu.reciprocal %80 {approx = true} : vector<4x8x1xf32> -> vector<4x8x1xf32>
    %82 = vector.broadcast %81 : vector<4x8x1xf32> to vector<4x8x8xf32>
    %83 = arith.mulf %78, %82 : vector<4x8x8xf32>
    %84 = arith.truncf %83 : vector<4x8x8xf32> to vector<4x8x8xbf16>
    %cst_23 = arith.constant dense<0.000000e+00> : vector<4x8x8xf32>
    %85 = tpu.matmul %84, %68, %cst_23 {dimension_numbers = #tpu.dot_dimension_numbers<[2], [1], [1], [2], [0, 0, 0, 1, 1, 2], [0], [0]>} : vector<4x8x8xbf16>, vector<4x8x8xbf16>, vector<4x8x8xf32> -> vector<4x8x8xf32>
    %86 = vector.extract_strided_slice %85 {offsets = [0, 0, 0], sizes = [1, 8, 8], strides = [1, 1, 1]} : vector<4x8x8xf32> to vector<1x8x8xf32>
    %87 = vector.shape_cast %86 : vector<1x8x8xf32> to vector<8x8xf32>
    %88 = vector.extract_strided_slice %85 {offsets = [1, 0, 0], sizes = [1, 8, 8], strides = [1, 1, 1]} : vector<4x8x8xf32> to vector<1x8x8xf32>
    %89 = vector.shape_cast %88 : vector<1x8x8xf32> to vector<8x8xf32>
    %90 = vector.extract_strided_slice %85 {offsets = [2, 0, 0], sizes = [1, 8, 8], strides = [1, 1, 1]} : vector<4x8x8xf32> to vector<1x8x8xf32>
    %91 = vector.shape_cast %90 : vector<1x8x8xf32> to vector<8x8xf32>
    %92 = vector.extract_strided_slice %85 {offsets = [3, 0, 0], sizes = [1, 8, 8], strides = [1, 1, 1]} : vector<4x8x8xf32> to vector<1x8x8xf32>
    %93 = vector.shape_cast %92 : vector<1x8x8xf32> to vector<8x8xf32>
    %94 = tpu.concatenate %87, %89, %91, %93 in 1 : vector<8x8xf32>, vector<8x8xf32>, vector<8x8xf32>, vector<8x8xf32> -> vector<8x32xf32>
    %95 = arith.truncf %94 : vector<8x32xf32> to vector<8x32xbf16>
    %c0_24 = arith.constant 0 : index
    %c0_25 = arith.constant 0 : index
    %c0_26 = arith.constant 0 : index
    %96 = vector.load %arg6[%c0_24, %c0_25, %c0_26] : memref<2x32x32xbf16, #tpu.memory_space<vmem>>, vector<1x32x32xbf16>
    %97 = vector.shape_cast %96 : vector<1x32x32xbf16> to vector<32x32xbf16>
    %cst_27 = arith.constant dense<0.000000e+00> : vector<8x32xf32>
    %98 = tpu.matmul %95, %97, %cst_27 {dimension_numbers = #tpu.dot_dimension_numbers<[1], [0], [0], [1], [0, 0, 1, 1], [], []>} : vector<8x32xbf16>, vector<32x32xbf16>, vector<8x32xf32> -> vector<8x32xf32>
    %c0_28 = arith.constant 0 : index
    %c0_29 = arith.constant 0 : index
    %c0_30 = arith.constant 0 : index
    %99 = vector.load %arg7[%c0_28, %c0_29, %c0_30] : memref<2x1x32xf32, #tpu.memory_space<vmem>>, vector<1x1x32xf32>
    %100 = vector.shape_cast %99 : vector<1x1x32xf32> to vector<1x32xf32>
    %101 = vector.broadcast %100 : vector<1x32xf32> to vector<8x32xf32>
    %102 = arith.addf %98, %101 : vector<8x32xf32>
    %103 = arith.addf %0, %102 : vector<8x32xf32>
    %c0_31 = arith.constant 0 : index
    %c0_32 = arith.constant 0 : index
    %c0_33 = arith.constant 0 : index
    %104 = vector.load %arg8[%c0_31, %c0_32, %c0_33] : memref<2x1x32xf32, #tpu.memory_space<vmem>>, vector<1x1x32xf32>
    %105 = vector.shape_cast %104 : vector<1x1x32xf32> to vector<1x32xf32>
    %c0_34 = arith.constant 0 : index
    %c0_35 = arith.constant 0 : index
    %c0_36 = arith.constant 0 : index
    %106 = vector.load %arg9[%c0_34, %c0_35, %c0_36] : memref<2x1x32xf32, #tpu.memory_space<vmem>>, vector<1x1x32xf32>
    %107 = vector.shape_cast %106 : vector<1x1x32xf32> to vector<1x32xf32>
    %cst_37 = arith.constant dense<0.000000e+00> : vector<8xf32>
    %108 = vector.multi_reduction <add>, %103, %cst_37 [1] : vector<8x32xf32> to vector<8xf32>
    %109 = vector.shape_cast %108 : vector<8xf32> to vector<8x1xf32>
    %cst_38 = arith.constant 3.200000e+01 : f32
    %110 = vector.broadcast %cst_38 : f32 to vector<8x1xf32>
    %111 = arith.divf %109, %110 : vector<8x1xf32>
    %112 = vector.broadcast %111 : vector<8x1xf32> to vector<8x32xf32>
    %113 = arith.subf %103, %112 : vector<8x32xf32>
    %114 = arith.mulf %113, %113 : vector<8x32xf32>
    %cst_39 = arith.constant dense<0.000000e+00> : vector<8xf32>
    %115 = vector.multi_reduction <add>, %114, %cst_39 [1] : vector<8x32xf32> to vector<8xf32>
    %116 = vector.shape_cast %115 : vector<8xf32> to vector<8x1xf32>
    %cst_40 = arith.constant 3.200000e+01 : f32
    %117 = vector.broadcast %cst_40 : f32 to vector<8x1xf32>
    %118 = arith.divf %116, %117 : vector<8x1xf32>
    %cst_41 = arith.constant 9.99999974E-6 : f32
    %119 = vector.broadcast %cst_41 : f32 to vector<8x1xf32>
    %120 = arith.addf %118, %119 : vector<8x1xf32>
    %121 = math.rsqrt %120 : vector<8x1xf32>
    %122 = vector.broadcast %121 : vector<8x1xf32> to vector<8x32xf32>
    %123 = arith.mulf %113, %122 : vector<8x32xf32>
    %124 = vector.broadcast %105 : vector<1x32xf32> to vector<8x32xf32>
    %125 = arith.mulf %123, %124 : vector<8x32xf32>
    %126 = vector.broadcast %107 : vector<1x32xf32> to vector<8x32xf32>
    %127 = arith.addf %125, %126 : vector<8x32xf32>
    %128 = arith.truncf %127 : vector<8x32xf32> to vector<8x32xbf16>
    %c0_42 = arith.constant 0 : index
    %c0_43 = arith.constant 0 : index
    %c0_44 = arith.constant 0 : index
    %129 = vector.load %arg10[%c0_42, %c0_43, %c0_44] : memref<2x32x128xbf16, #tpu.memory_space<vmem>>, vector<1x32x128xbf16>
    %130 = vector.shape_cast %129 : vector<1x32x128xbf16> to vector<32x128xbf16>
    %cst_45 = arith.constant dense<0.000000e+00> : vector<8x128xf32>
    %131 = tpu.matmul %128, %130, %cst_45 {dimension_numbers = #tpu.dot_dimension_numbers<[1], [0], [0], [1], [0, 0, 1, 1], [], []>} : vector<8x32xbf16>, vector<32x128xbf16>, vector<8x128xf32> -> vector<8x128xf32>
    %c0_46 = arith.constant 0 : index
    %c0_47 = arith.constant 0 : index
    %c0_48 = arith.constant 0 : index
    %132 = vector.load %arg11[%c0_46, %c0_47, %c0_48] : memref<2x1x128xf32, #tpu.memory_space<vmem>>, vector<1x1x128xf32>
    %133 = vector.shape_cast %132 : vector<1x1x128xf32> to vector<1x128xf32>
    %134 = vector.broadcast %133 : vector<1x128xf32> to vector<8x128xf32>
    %135 = arith.addf %131, %134 : vector<8x128xf32>
    %cst_49 = arith.constant 5.000000e-01 : f32
    %136 = vector.broadcast %cst_49 : f32 to vector<8x128xf32>
    %137 = arith.mulf %136, %135 : vector<8x128xf32>
    %cst_50 = arith.constant 0.707106769 : f32
    %138 = vector.broadcast %cst_50 : f32 to vector<8x128xf32>
    %139 = arith.mulf %135, %138 : vector<8x128xf32>
    %140 = math.erf %139 : vector<8x128xf32>
    %cst_51 = arith.constant 1.000000e+00 : f32
    %141 = vector.broadcast %cst_51 : f32 to vector<8x128xf32>
    %142 = arith.addf %141, %140 : vector<8x128xf32>
    %143 = arith.mulf %137, %142 : vector<8x128xf32>
    %144 = arith.truncf %143 : vector<8x128xf32> to vector<8x128xbf16>
    %c0_52 = arith.constant 0 : index
    %c0_53 = arith.constant 0 : index
    %c0_54 = arith.constant 0 : index
    %145 = vector.load %arg12[%c0_52, %c0_53, %c0_54] : memref<2x128x32xbf16, #tpu.memory_space<vmem>>, vector<1x128x32xbf16>
    %146 = vector.shape_cast %145 : vector<1x128x32xbf16> to vector<128x32xbf16>
    %cst_55 = arith.constant dense<0.000000e+00> : vector<8x32xf32>
    %147 = tpu.matmul %144, %146, %cst_55 {dimension_numbers = #tpu.dot_dimension_numbers<[1], [0], [0], [1], [0, 0, 1, 1], [], []>} : vector<8x128xbf16>, vector<128x32xbf16>, vector<8x32xf32> -> vector<8x32xf32>
    %c0_56 = arith.constant 0 : index
    %c0_57 = arith.constant 0 : index
    %c0_58 = arith.constant 0 : index
    %148 = vector.load %arg13[%c0_56, %c0_57, %c0_58] : memref<2x1x32xf32, #tpu.memory_space<vmem>>, vector<1x1x32xf32>
    %149 = vector.shape_cast %148 : vector<1x1x32xf32> to vector<1x32xf32>
    %150 = vector.broadcast %149 : vector<1x32xf32> to vector<8x32xf32>
    %151 = arith.addf %147, %150 : vector<8x32xf32>
    %152 = arith.addf %103, %151 : vector<8x32xf32>
    %c1 = arith.constant 1 : index
    %c0_59 = arith.constant 0 : index
    %c0_60 = arith.constant 0 : index
    %153 = vector.load %arg2[%c1, %c0_59, %c0_60] : memref<2x1x32xf32, #tpu.memory_space<vmem>>, vector<1x1x32xf32>
    %154 = vector.shape_cast %153 : vector<1x1x32xf32> to vector<1x32xf32>
    %c1_61 = arith.constant 1 : index
    %c0_62 = arith.constant 0 : index
    %c0_63 = arith.constant 0 : index
    %155 = vector.load %arg3[%c1_61, %c0_62, %c0_63] : memref<2x1x32xf32, #tpu.memory_space<vmem>>, vector<1x1x32xf32>
    %156 = vector.shape_cast %155 : vector<1x1x32xf32> to vector<1x32xf32>
    %cst_64 = arith.constant dense<0.000000e+00> : vector<8xf32>
    %157 = vector.multi_reduction <add>, %152, %cst_64 [1] : vector<8x32xf32> to vector<8xf32>
    %158 = vector.shape_cast %157 : vector<8xf32> to vector<8x1xf32>
    %cst_65 = arith.constant 3.200000e+01 : f32
    %159 = vector.broadcast %cst_65 : f32 to vector<8x1xf32>
    %160 = arith.divf %158, %159 : vector<8x1xf32>
    %161 = vector.broadcast %160 : vector<8x1xf32> to vector<8x32xf32>
    %162 = arith.subf %152, %161 : vector<8x32xf32>
    %163 = arith.mulf %162, %162 : vector<8x32xf32>
    %cst_66 = arith.constant dense<0.000000e+00> : vector<8xf32>
    %164 = vector.multi_reduction <add>, %163, %cst_66 [1] : vector<8x32xf32> to vector<8xf32>
    %165 = vector.shape_cast %164 : vector<8xf32> to vector<8x1xf32>
    %cst_67 = arith.constant 3.200000e+01 : f32
    %166 = vector.broadcast %cst_67 : f32 to vector<8x1xf32>
    %167 = arith.divf %165, %166 : vector<8x1xf32>
    %cst_68 = arith.constant 9.99999974E-6 : f32
    %168 = vector.broadcast %cst_68 : f32 to vector<8x1xf32>
    %169 = arith.addf %167, %168 : vector<8x1xf32>
    %170 = math.rsqrt %169 : vector<8x1xf32>
    %171 = vector.broadcast %170 : vector<8x1xf32> to vector<8x32xf32>
    %172 = arith.mulf %162, %171 : vector<8x32xf32>
    %173 = vector.broadcast %154 : vector<1x32xf32> to vector<8x32xf32>
    %174 = arith.mulf %172, %173 : vector<8x32xf32>
    %175 = vector.broadcast %156 : vector<1x32xf32> to vector<8x32xf32>
    %176 = arith.addf %174, %175 : vector<8x32xf32>
    %177 = arith.truncf %176 : vector<8x32xf32> to vector<8x32xbf16>
    %c1_69 = arith.constant 1 : index
    %c0_70 = arith.constant 0 : index
    %c0_71 = arith.constant 0 : index
    %178 = vector.load %arg4[%c1_69, %c0_70, %c0_71] : memref<2x32x96xbf16, #tpu.memory_space<vmem>>, vector<1x32x96xbf16>
    %179 = vector.shape_cast %178 : vector<1x32x96xbf16> to vector<32x96xbf16>
    %cst_72 = arith.constant dense<0.000000e+00> : vector<8x96xf32>
    %180 = tpu.matmul %177, %179, %cst_72 {dimension_numbers = #tpu.dot_dimension_numbers<[1], [0], [0], [1], [0, 0, 1, 1], [], []>} : vector<8x32xbf16>, vector<32x96xbf16>, vector<8x96xf32> -> vector<8x96xf32>
    %c1_73 = arith.constant 1 : index
    %c0_74 = arith.constant 0 : index
    %c0_75 = arith.constant 0 : index
    %181 = vector.load %arg5[%c1_73, %c0_74, %c0_75] : memref<2x1x96xf32, #tpu.memory_space<vmem>>, vector<1x1x96xf32>
    %182 = vector.shape_cast %181 : vector<1x1x96xf32> to vector<1x96xf32>
    %183 = vector.broadcast %182 : vector<1x96xf32> to vector<8x96xf32>
    %184 = arith.addf %180, %183 : vector<8x96xf32>
    %185 = vector.extract_strided_slice %184 {offsets = [0, 0], sizes = [8, 8], strides = [1, 1]} : vector<8x96xf32> to vector<8x8xf32>
    %186 = vector.extract_strided_slice %184 {offsets = [0, 8], sizes = [8, 8], strides = [1, 1]} : vector<8x96xf32> to vector<8x8xf32>
    %187 = vector.extract_strided_slice %184 {offsets = [0, 16], sizes = [8, 8], strides = [1, 1]} : vector<8x96xf32> to vector<8x8xf32>
    %188 = vector.extract_strided_slice %184 {offsets = [0, 24], sizes = [8, 8], strides = [1, 1]} : vector<8x96xf32> to vector<8x8xf32>
    %189 = vector.shape_cast %185 : vector<8x8xf32> to vector<1x8x8xf32>
    %190 = vector.shape_cast %186 : vector<8x8xf32> to vector<1x8x8xf32>
    %191 = vector.shape_cast %187 : vector<8x8xf32> to vector<1x8x8xf32>
    %192 = vector.shape_cast %188 : vector<8x8xf32> to vector<1x8x8xf32>
    %193 = tpu.concatenate %189, %190, %191, %192 in 0 : vector<1x8x8xf32>, vector<1x8x8xf32>, vector<1x8x8xf32>, vector<1x8x8xf32> -> vector<4x8x8xf32>
    %194 = vector.extract_strided_slice %184 {offsets = [0, 32], sizes = [8, 8], strides = [1, 1]} : vector<8x96xf32> to vector<8x8xf32>
    %195 = vector.extract_strided_slice %184 {offsets = [0, 40], sizes = [8, 8], strides = [1, 1]} : vector<8x96xf32> to vector<8x8xf32>
    %196 = vector.extract_strided_slice %184 {offsets = [0, 48], sizes = [8, 8], strides = [1, 1]} : vector<8x96xf32> to vector<8x8xf32>
    %197 = vector.extract_strided_slice %184 {offsets = [0, 56], sizes = [8, 8], strides = [1, 1]} : vector<8x96xf32> to vector<8x8xf32>
    %198 = vector.shape_cast %194 : vector<8x8xf32> to vector<1x8x8xf32>
    %199 = vector.shape_cast %195 : vector<8x8xf32> to vector<1x8x8xf32>
    %200 = vector.shape_cast %196 : vector<8x8xf32> to vector<1x8x8xf32>
    %201 = vector.shape_cast %197 : vector<8x8xf32> to vector<1x8x8xf32>
    %202 = tpu.concatenate %198, %199, %200, %201 in 0 : vector<1x8x8xf32>, vector<1x8x8xf32>, vector<1x8x8xf32>, vector<1x8x8xf32> -> vector<4x8x8xf32>
    %203 = vector.extract_strided_slice %184 {offsets = [0, 64], sizes = [8, 8], strides = [1, 1]} : vector<8x96xf32> to vector<8x8xf32>
    %204 = vector.extract_strided_slice %184 {offsets = [0, 72], sizes = [8, 8], strides = [1, 1]} : vector<8x96xf32> to vector<8x8xf32>
    %205 = vector.extract_strided_slice %184 {offsets = [0, 80], sizes = [8, 8], strides = [1, 1]} : vector<8x96xf32> to vector<8x8xf32>
    %206 = vector.extract_strided_slice %184 {offsets = [0, 88], sizes = [8, 8], strides = [1, 1]} : vector<8x96xf32> to vector<8x8xf32>
    %207 = vector.shape_cast %203 : vector<8x8xf32> to vector<1x8x8xf32>
    %208 = vector.shape_cast %204 : vector<8x8xf32> to vector<1x8x8xf32>
    %209 = vector.shape_cast %205 : vector<8x8xf32> to vector<1x8x8xf32>
    %210 = vector.shape_cast %206 : vector<8x8xf32> to vector<1x8x8xf32>
    %211 = tpu.concatenate %207, %208, %209, %210 in 0 : vector<1x8x8xf32>, vector<1x8x8xf32>, vector<1x8x8xf32>, vector<1x8x8xf32> -> vector<4x8x8xf32>
    %cst_76 = arith.constant 0.353553385 : f32
    %212 = vector.broadcast %cst_76 : f32 to vector<4x8x8xf32>
    %213 = arith.mulf %193, %212 : vector<4x8x8xf32>
    %214 = arith.truncf %213 : vector<4x8x8xf32> to vector<4x8x8xbf16>
    %215 = arith.truncf %202 : vector<4x8x8xf32> to vector<4x8x8xbf16>
    %216 = arith.truncf %211 : vector<4x8x8xf32> to vector<4x8x8xbf16>
    %cst_77 = arith.constant dense<0.000000e+00> : vector<4x8x8xf32>
    %217 = tpu.matmul %214, %215, %cst_77 {dimension_numbers = #tpu.dot_dimension_numbers<[2], [2], [1], [1], [0, 0, 0, 1, 1, 1], [0], [0]>} : vector<4x8x8xbf16>, vector<4x8x8xbf16>, vector<4x8x8xf32> -> vector<4x8x8xf32>
    %cst_78 = arith.constant -1.000000e+30 : f32
    %218 = vector.shape_cast %4 : vector<1x8x8xi1> to vector<1x8x8xi1>
    %219 = vector.broadcast %218 : vector<1x8x8xi1> to vector<4x8x8xi1>
    %220 = vector.broadcast %cst_78 : f32 to vector<4x8x8xf32>
    %221 = arith.select %219, %217, %220 : vector<4x8x8xi1>, vector<4x8x8xf32>
    %cst_79 = arith.constant dense<0xFF800000> : vector<4x8xf32>
    %222 = vector.multi_reduction <maximumf>, %221, %cst_79 [2] : vector<4x8x8xf32> to vector<4x8xf32>
    %223 = vector.shape_cast %222 : vector<4x8xf32> to vector<4x8x1xf32>
    %224 = vector.broadcast %223 : vector<4x8x1xf32> to vector<4x8x8xf32>
    %225 = arith.subf %221, %224 : vector<4x8x8xf32>
    %226 = math.exp %225 : vector<4x8x8xf32>
    %cst_80 = arith.constant dense<0.000000e+00> : vector<4x8xf32>
    %227 = vector.multi_reduction <add>, %226, %cst_80 [2] : vector<4x8x8xf32> to vector<4x8xf32>
    %228 = vector.shape_cast %227 : vector<4x8xf32> to vector<4x8x1xf32>
    %229 = tpu.reciprocal %228 {approx = true} : vector<4x8x1xf32> -> vector<4x8x1xf32>
    %230 = vector.broadcast %229 : vector<4x8x1xf32> to vector<4x8x8xf32>
    %231 = arith.mulf %226, %230 : vector<4x8x8xf32>
    %232 = arith.truncf %231 : vector<4x8x8xf32> to vector<4x8x8xbf16>
    %cst_81 = arith.constant dense<0.000000e+00> : vector<4x8x8xf32>
    %233 = tpu.matmul %232, %216, %cst_81 {dimension_numbers = #tpu.dot_dimension_numbers<[2], [1], [1], [2], [0, 0, 0, 1, 1, 2], [0], [0]>} : vector<4x8x8xbf16>, vector<4x8x8xbf16>, vector<4x8x8xf32> -> vector<4x8x8xf32>
    %234 = vector.extract_strided_slice %233 {offsets = [0, 0, 0], sizes = [1, 8, 8], strides = [1, 1, 1]} : vector<4x8x8xf32> to vector<1x8x8xf32>
    %235 = vector.shape_cast %234 : vector<1x8x8xf32> to vector<8x8xf32>
    %236 = vector.extract_strided_slice %233 {offsets = [1, 0, 0], sizes = [1, 8, 8], strides = [1, 1, 1]} : vector<4x8x8xf32> to vector<1x8x8xf32>
    %237 = vector.shape_cast %236 : vector<1x8x8xf32> to vector<8x8xf32>
    %238 = vector.extract_strided_slice %233 {offsets = [2, 0, 0], sizes = [1, 8, 8], strides = [1, 1, 1]} : vector<4x8x8xf32> to vector<1x8x8xf32>
    %239 = vector.shape_cast %238 : vector<1x8x8xf32> to vector<8x8xf32>
    %240 = vector.extract_strided_slice %233 {offsets = [3, 0, 0], sizes = [1, 8, 8], strides = [1, 1, 1]} : vector<4x8x8xf32> to vector<1x8x8xf32>
    %241 = vector.shape_cast %240 : vector<1x8x8xf32> to vector<8x8xf32>
    %242 = tpu.concatenate %235, %237, %239, %241 in 1 : vector<8x8xf32>, vector<8x8xf32>, vector<8x8xf32>, vector<8x8xf32> -> vector<8x32xf32>
    %243 = arith.truncf %242 : vector<8x32xf32> to vector<8x32xbf16>
    %c1_82 = arith.constant 1 : index
    %c0_83 = arith.constant 0 : index
    %c0_84 = arith.constant 0 : index
    %244 = vector.load %arg6[%c1_82, %c0_83, %c0_84] : memref<2x32x32xbf16, #tpu.memory_space<vmem>>, vector<1x32x32xbf16>
    %245 = vector.shape_cast %244 : vector<1x32x32xbf16> to vector<32x32xbf16>
    %cst_85 = arith.constant dense<0.000000e+00> : vector<8x32xf32>
    %246 = tpu.matmul %243, %245, %cst_85 {dimension_numbers = #tpu.dot_dimension_numbers<[1], [0], [0], [1], [0, 0, 1, 1], [], []>} : vector<8x32xbf16>, vector<32x32xbf16>, vector<8x32xf32> -> vector<8x32xf32>
    %c1_86 = arith.constant 1 : index
    %c0_87 = arith.constant 0 : index
    %c0_88 = arith.constant 0 : index
    %247 = vector.load %arg7[%c1_86, %c0_87, %c0_88] : memref<2x1x32xf32, #tpu.memory_space<vmem>>, vector<1x1x32xf32>
    %248 = vector.shape_cast %247 : vector<1x1x32xf32> to vector<1x32xf32>
    %249 = vector.broadcast %248 : vector<1x32xf32> to vector<8x32xf32>
    %250 = arith.addf %246, %249 : vector<8x32xf32>
    %251 = arith.addf %152, %250 : vector<8x32xf32>
    %c1_89 = arith.constant 1 : index
    %c0_90 = arith.constant 0 : index
    %c0_91 = arith.constant 0 : index
    %252 = vector.load %arg8[%c1_89, %c0_90, %c0_91] : memref<2x1x32xf32, #tpu.memory_space<vmem>>, vector<1x1x32xf32>
    %253 = vector.shape_cast %252 : vector<1x1x32xf32> to vector<1x32xf32>
    %c1_92 = arith.constant 1 : index
    %c0_93 = arith.constant 0 : index
    %c0_94 = arith.constant 0 : index
    %254 = vector.load %arg9[%c1_92, %c0_93, %c0_94] : memref<2x1x32xf32, #tpu.memory_space<vmem>>, vector<1x1x32xf32>
    %255 = vector.shape_cast %254 : vector<1x1x32xf32> to vector<1x32xf32>
    %cst_95 = arith.constant dense<0.000000e+00> : vector<8xf32>
    %256 = vector.multi_reduction <add>, %251, %cst_95 [1] : vector<8x32xf32> to vector<8xf32>
    %257 = vector.shape_cast %256 : vector<8xf32> to vector<8x1xf32>
    %cst_96 = arith.constant 3.200000e+01 : f32
    %258 = vector.broadcast %cst_96 : f32 to vector<8x1xf32>
    %259 = arith.divf %257, %258 : vector<8x1xf32>
    %260 = vector.broadcast %259 : vector<8x1xf32> to vector<8x32xf32>
    %261 = arith.subf %251, %260 : vector<8x32xf32>
    %262 = arith.mulf %261, %261 : vector<8x32xf32>
    %cst_97 = arith.constant dense<0.000000e+00> : vector<8xf32>
    %263 = vector.multi_reduction <add>, %262, %cst_97 [1] : vector<8x32xf32> to vector<8xf32>
    %264 = vector.shape_cast %263 : vector<8xf32> to vector<8x1xf32>
    %cst_98 = arith.constant 3.200000e+01 : f32
    %265 = vector.broadcast %cst_98 : f32 to vector<8x1xf32>
    %266 = arith.divf %264, %265 : vector<8x1xf32>
    %cst_99 = arith.constant 9.99999974E-6 : f32
    %267 = vector.broadcast %cst_99 : f32 to vector<8x1xf32>
    %268 = arith.addf %266, %267 : vector<8x1xf32>
    %269 = math.rsqrt %268 : vector<8x1xf32>
    %270 = vector.broadcast %269 : vector<8x1xf32> to vector<8x32xf32>
    %271 = arith.mulf %261, %270 : vector<8x32xf32>
    %272 = vector.broadcast %253 : vector<1x32xf32> to vector<8x32xf32>
    %273 = arith.mulf %271, %272 : vector<8x32xf32>
    %274 = vector.broadcast %255 : vector<1x32xf32> to vector<8x32xf32>
    %275 = arith.addf %273, %274 : vector<8x32xf32>
    %276 = arith.truncf %275 : vector<8x32xf32> to vector<8x32xbf16>
    %c1_100 = arith.constant 1 : index
    %c0_101 = arith.constant 0 : index
    %c0_102 = arith.constant 0 : index
    %277 = vector.load %arg10[%c1_100, %c0_101, %c0_102] : memref<2x32x128xbf16, #tpu.memory_space<vmem>>, vector<1x32x128xbf16>
    %278 = vector.shape_cast %277 : vector<1x32x128xbf16> to vector<32x128xbf16>
    %cst_103 = arith.constant dense<0.000000e+00> : vector<8x128xf32>
    %279 = tpu.matmul %276, %278, %cst_103 {dimension_numbers = #tpu.dot_dimension_numbers<[1], [0], [0], [1], [0, 0, 1, 1], [], []>} : vector<8x32xbf16>, vector<32x128xbf16>, vector<8x128xf32> -> vector<8x128xf32>
    %c1_104 = arith.constant 1 : index
    %c0_105 = arith.constant 0 : index
    %c0_106 = arith.constant 0 : index
    %280 = vector.load %arg11[%c1_104, %c0_105, %c0_106] : memref<2x1x128xf32, #tpu.memory_space<vmem>>, vector<1x1x128xf32>
    %281 = vector.shape_cast %280 : vector<1x1x128xf32> to vector<1x128xf32>
    %282 = vector.broadcast %281 : vector<1x128xf32> to vector<8x128xf32>
    %283 = arith.addf %279, %282 : vector<8x128xf32>
    %cst_107 = arith.constant 5.000000e-01 : f32
    %284 = vector.broadcast %cst_107 : f32 to vector<8x128xf32>
    %285 = arith.mulf %284, %283 : vector<8x128xf32>
    %cst_108 = arith.constant 0.707106769 : f32
    %286 = vector.broadcast %cst_108 : f32 to vector<8x128xf32>
    %287 = arith.mulf %283, %286 : vector<8x128xf32>
    %288 = math.erf %287 : vector<8x128xf32>
    %cst_109 = arith.constant 1.000000e+00 : f32
    %289 = vector.broadcast %cst_109 : f32 to vector<8x128xf32>
    %290 = arith.addf %289, %288 : vector<8x128xf32>
    %291 = arith.mulf %285, %290 : vector<8x128xf32>
    %292 = arith.truncf %291 : vector<8x128xf32> to vector<8x128xbf16>
    %c1_110 = arith.constant 1 : index
    %c0_111 = arith.constant 0 : index
    %c0_112 = arith.constant 0 : index
    %293 = vector.load %arg12[%c1_110, %c0_111, %c0_112] : memref<2x128x32xbf16, #tpu.memory_space<vmem>>, vector<1x128x32xbf16>
    %294 = vector.shape_cast %293 : vector<1x128x32xbf16> to vector<128x32xbf16>
    %cst_113 = arith.constant dense<0.000000e+00> : vector<8x32xf32>
    %295 = tpu.matmul %292, %294, %cst_113 {dimension_numbers = #tpu.dot_dimension_numbers<[1], [0], [0], [1], [0, 0, 1, 1], [], []>} : vector<8x128xbf16>, vector<128x32xbf16>, vector<8x32xf32> -> vector<8x32xf32>
    %c1_114 = arith.constant 1 : index
    %c0_115 = arith.constant 0 : index
    %c0_116 = arith.constant 0 : index
    %296 = vector.load %arg13[%c1_114, %c0_115, %c0_116] : memref<2x1x32xf32, #tpu.memory_space<vmem>>, vector<1x1x32xf32>
    %297 = vector.shape_cast %296 : vector<1x1x32xf32> to vector<1x32xf32>
    %298 = vector.broadcast %297 : vector<1x32xf32> to vector<8x32xf32>
    %299 = arith.addf %295, %298 : vector<8x32xf32>
    %300 = arith.addf %251, %299 : vector<8x32xf32>
    %301 = vector.extract_strided_slice %300 {offsets = [7, 0], sizes = [1, 32], strides = [1, 1]} : vector<8x32xf32> to vector<1x32xf32>
    %c0_117 = arith.constant 0 : index
    %c0_118 = arith.constant 0 : index
    %302 = vector.load %arg14[%c0_117, %c0_118] : memref<1x32xf32, #tpu.memory_space<vmem>>, vector<1x32xf32>
    %c0_119 = arith.constant 0 : index
    %c0_120 = arith.constant 0 : index
    %303 = vector.load %arg15[%c0_119, %c0_120] : memref<1x32xf32, #tpu.memory_space<vmem>>, vector<1x32xf32>
    %cst_121 = arith.constant dense<0.000000e+00> : vector<1xf32>
    %304 = vector.multi_reduction <add>, %301, %cst_121 [1] : vector<1x32xf32> to vector<1xf32>
    %305 = vector.shape_cast %304 : vector<1xf32> to vector<1x1xf32>
    %cst_122 = arith.constant 3.200000e+01 : f32
    %306 = vector.broadcast %cst_122 : f32 to vector<1x1xf32>
    %307 = arith.divf %305, %306 : vector<1x1xf32>
    %308 = vector.broadcast %307 : vector<1x1xf32> to vector<1x32xf32>
    %309 = arith.subf %301, %308 : vector<1x32xf32>
    %310 = arith.mulf %309, %309 : vector<1x32xf32>
    %cst_123 = arith.constant dense<0.000000e+00> : vector<1xf32>
    %311 = vector.multi_reduction <add>, %310, %cst_123 [1] : vector<1x32xf32> to vector<1xf32>
    %312 = vector.shape_cast %311 : vector<1xf32> to vector<1x1xf32>
    %cst_124 = arith.constant 3.200000e+01 : f32
    %313 = vector.broadcast %cst_124 : f32 to vector<1x1xf32>
    %314 = arith.divf %312, %313 : vector<1x1xf32>
    %cst_125 = arith.constant 9.99999974E-6 : f32
    %315 = vector.broadcast %cst_125 : f32 to vector<1x1xf32>
    %316 = arith.addf %314, %315 : vector<1x1xf32>
    %317 = math.rsqrt %316 : vector<1x1xf32>
    %318 = vector.broadcast %317 : vector<1x1xf32> to vector<1x32xf32>
    %319 = arith.mulf %309, %318 : vector<1x32xf32>
    %320 = arith.mulf %319, %302 : vector<1x32xf32>
    %321 = arith.addf %320, %303 : vector<1x32xf32>
    %322 = vector.shape_cast %321 : vector<1x32xf32> to vector<1x1x32xf32>
    %c0_126 = arith.constant 0 : index
    %c0_127 = arith.constant 0 : index
    %c0_128 = arith.constant 0 : index
    %323 = vector.load %arg16[%c0_126, %c0_127, %c0_128] : memref<1x1x32xf32, #tpu.memory_space<vmem>>, vector<1x1x32xf32>
    tpu.vector_store %arg16[%c0_126, %c0_127, %c0_128], %322 {strides = array<i32>} : memref<1x1x32xf32, #tpu.memory_space<vmem>>, vector<1x1x32xf32>,
    return
  }
  func.func @transform_0(%arg0: i32) -> (i32, i32) {
    %c0_i32 = arith.constant 0 : i32
    %c0_i32_0 = arith.constant 0 : i32
    return %arg0, %c0_i32 : i32, i32
  }
  func.func @transform_1(%arg0: i32) -> (i32, i32, i32) {
    %c0_i32 = arith.constant 0 : i32
    %c0_i32_0 = arith.constant 0 : i32
    %c0_i32_1 = arith.constant 0 : i32
    %c0_i32_2 = arith.constant 0 : i32
    return %c0_i32, %c0_i32_0, %c0_i32_1 : i32, i32, i32
  }
  func.func @transform_2(%arg0: i32) -> (i32, i32, i32) {
    %c0_i32 = arith.constant 0 : i32
    %c0_i32_0 = arith.constant 0 : i32
    %c0_i32_1 = arith.constant 0 : i32
    %c0_i32_2 = arith.constant 0 : i32
    return %c0_i32, %c0_i32_0, %c0_i32_1 : i32, i32, i32
  }
  func.func @transform_3(%arg0: i32) -> (i32, i32, i32) {
    %c0_i32 = arith.constant 0 : i32
    %c0_i32_0 = arith.constant 0 : i32
    %c0_i32_1 = arith.constant 0 : i32
    %c0_i32_2 = arith.constant 0 : i32
    return %c0_i32, %c0_i32_0, %c0_i32_1 : i32, i32, i32
  }
  func.func @transform_4(%arg0: i32) -> (i32, i32, i32) {
    %c0_i32 = arith.constant 0 : i32
    %c0_i32_0 = arith.constant 0 : i32
    %c0_i32_1 = arith.constant 0 : i32
    %c0_i32_2 = arith.constant 0 : i32
    return %c0_i32, %c0_i32_0, %c0_i32_1 : i32, i32, i32
  }
  func.func @transform_5(%arg0: i32) -> (i32, i32, i32) {
    %c0_i32 = arith.constant 0 : i32
    %c0_i32_0 = arith.constant 0 : i32
    %c0_i32_1 = arith.constant 0 : i32
    %c0_i32_2 = arith.constant 0 : i32
    return %c0_i32, %c0_i32_0, %c0_i32_1 : i32, i32, i32
  }
  func.func @transform_6(%arg0: i32) -> (i32, i32, i32) {
    %c0_i32 = arith.constant 0 : i32
    %c0_i32_0 = arith.constant 0 : i32
    %c0_i32_1 = arith.constant 0 : i32
    %c0_i32_2 = arith.constant 0 : i32
    return %c0_i32, %c0_i32_0, %c0_i32_1 : i32, i32, i32
  }
  func.func @transform_7(%arg0: i32) -> (i32, i32, i32) {
    %c0_i32 = arith.constant 0 : i32
    %c0_i32_0 = arith.constant 0 : i32
    %c0_i32_1 = arith.constant 0 : i32
    %c0_i32_2 = arith.constant 0 : i32
    return %c0_i32, %c0_i32_0, %c0_i32_1 : i32, i32, i32
  }
  func.func @transform_8(%arg0: i32) -> (i32, i32, i32) {
    %c0_i32 = arith.constant 0 : i32
    %c0_i32_0 = arith.constant 0 : i32
    %c0_i32_1 = arith.constant 0 : i32
    %c0_i32_2 = arith.constant 0 : i32
    return %c0_i32, %c0_i32_0, %c0_i32_1 : i32, i32, i32
  }
  func.func @transform_9(%arg0: i32) -> (i32, i32, i32) {
    %c0_i32 = arith.constant 0 : i32
    %c0_i32_0 = arith.constant 0 : i32
    %c0_i32_1 = arith.constant 0 : i32
    %c0_i32_2 = arith.constant 0 : i32
    return %c0_i32, %c0_i32_0, %c0_i32_1 : i32, i32, i32
  }
  func.func @transform_10(%arg0: i32) -> (i32, i32, i32) {
    %c0_i32 = arith.constant 0 : i32
    %c0_i32_0 = arith.constant 0 : i32
    %c0_i32_1 = arith.constant 0 : i32
    %c0_i32_2 = arith.constant 0 : i32
    return %c0_i32, %c0_i32_0, %c0_i32_1 : i32, i32, i32
  }
  func.func @transform_11(%arg0: i32) -> (i32, i32, i32) {
    %c0_i32 = arith.constant 0 : i32
    %c0_i32_0 = arith.constant 0 : i32
    %c0_i32_1 = arith.constant 0 : i32
    %c0_i32_2 = arith.constant 0 : i32
    return %c0_i32, %c0_i32_0, %c0_i32_1 : i32, i32, i32
  }
  func.func @transform_12(%arg0: i32) -> (i32, i32, i32) {
    %c0_i32 = arith.constant 0 : i32
    %c0_i32_0 = arith.constant 0 : i32
    %c0_i32_1 = arith.constant 0 : i32
    %c0_i32_2 = arith.constant 0 : i32
    return %c0_i32, %c0_i32_0, %c0_i32_1 : i32, i32, i32
  }
  func.func @transform_13(%arg0: i32) -> (i32, i32) {
    %c0_i32 = arith.constant 0 : i32
    %c0_i32_0 = arith.constant 0 : i32
    %c0_i32_1 = arith.constant 0 : i32
    return %c0_i32, %c0_i32_0 : i32, i32
  }
  func.func @transform_14(%arg0: i32) -> (i32, i32) {
    %c0_i32 = arith.constant 0 : i32
    %c0_i32_0 = arith.constant 0 : i32
    %c0_i32_1 = arith.constant 0 : i32
    return %c0_i32, %c0_i32_0 : i32, i32
  }
  func.func @transform_15(%arg0: i32) -> (i32, i32, i32) {
    %c0_i32 = arith.constant 0 : i32
    %c0_i32_0 = arith.constant 0 : i32
    %c0_i32_1 = arith.constant 0 : i32
    return %arg0, %c0_i32, %c0_i32_0 : i32, i32, i32
  }
}

</mosaic_0001>

<bundles_post_ra>
// kernel: gpt_forward.3
= control target key start
LH: loop header
LB: loop body
LE: loop exit
PB: predicated region body
PF: predicated region fallthrough
CT: control target
= control target key end

     0   :  { %7 = vsyncpa [#allocation3], 0  ;;  %s784_s0 = inlined_call_operand.vmem [shape: f32[2,1,32], index: 0, kind: input, shape index: {}]   ;;  %s785_s1 = inlined_call_operand.vmem [shape: bf16[512,32], index: 1, kind: input, shape index: {}]   ;;  %s786_s2 = inlined_call_operand.hbm [shape: f32[2,1,512], index: 2, kind: output, shape index: {}]  }
   0x1   :  { %9 = vsyncpa [#allocation3 + $0x1], 0  ;;  %s656_s9 = smov 0   ;;  %s658_s10 = smov 0  }
   0x2   :  { %s660_s11 = smov 0   ;;  %s662_s12 = smov 0  }
   0x3 LB: > { %s677_s13 = sadd.s32 4294967295, %s636_s12   ;;  %s439_s14 = sadd.s32 4294967294, %s636_s12   ;;  %s636_s12 = sphi %s662_s12, %s792_s12   ;;  %s632_s11 = sphi %s660_s11, %s791_s11   ;;  %s628_s10 = sphi %s658_s10, %s790_s10   ;;  %s624_s9 = sphi %s656_s9, %s789_s9  }
   0x4   : > { %s681_s15 = sadd.s32 1, %s636_s12   ;;  %s69_s16 = sadd.s32 1, %s632_s11 }
   0x5   : > { %s66_s17 = ssub.s32 %s636_s12, %s681_s15  ;;  %p79_p0 = scmp.ne.s32.totalorder %s632_s11, %s628_s10 }
   0x6   : > { %p67_p1 = scmp.eq.s32.totalorder %s66_s17, 0  ;;  %p80_p2 = scmp.eq.s32.totalorder %s677_s13, 1 }
   0x7   : > { %p85_p3 = scmp.ne.s32.totalorder %s628_s10, %s624_s9  ;;  %p86_p4 = scmp.eq.s32.totalorder %s439_s14, 1 }
   0x8   : > { %s692_s18 = scalar_select %p67_p1, %s632_s11, %s69_s16  }
   0x9   : > { %p694_p5 = por %p80_p2, %p79_p0  ;;  %p698_p6 = por %p86_p4, %p85_p3 }
   0xa   : > { %p442_p7 = scmp.ge.s32.totalorder %s636_s12, 1  ;;  %p116_p8 = scmp.lt.s32.totalorder %s636_s12, 3 }
   0xc   : > { %p117_p9 = pnand %p442_p7, %p116_p8 }
   0xd   : > { %s444_s21 = sshll.u32 (!%p117_p9), %s677_s13, 5  ;;  %s135_s30 = sand.u32 (!%p117_p9), 1, %s628_s10  }
   0xe   : > { %120 = sbr.rel (%p117_p9) target bundleno = 224 (0xe0), region = 28  ;;  %p139_p10 = scmp.lt.s32.totalorder (!%p117_p9), %s444_s21, 63 }
   0xf   : > { %s513_s3 = sshll.u32 (!%p117_p9), %s677_s13, 1  ;;  %s443_s4 = sshll.u32 (!%p117_p9), %s135_s30, 2 }
  0x10   : > { %s373_s7 = scalar_lea.hbm (!%p117_p9), %s786_s2, %s513_s3  ;;  %s137_s8 = scalar_lea.vmem (!%p117_p9), [#allocation2], %s443_s4 }
  0x11   : > { %s374_s14 = sshll.u32 (!%p117_p9), %s137_s8, 4  ;;  %s376_s16 = sshll.u32 (!%p117_p9), %s373_s7, 4  ;;  %s375_s14 = int_to_ptr.vmem [resolvable:$true] %s374_s14  ;;  %s377_s16 = int_to_ptr.hbm [resolvable:$true] %s376_s16 }
  0x12   : > { %s363_s13 = scalar_lea.sflag (!%p117_p9), [#allocation3], %s135_s30  ;;  %s588_s17 = sshra.s32 (!%p117_p9), %s377_s16, 4  ;;  %s589_s17 = int_to_ptr.hbm [resolvable:$true] %s588_s17 }
  0x13   : > { %s794_s21 = smov (!%p139_p10, %s444_s21), 63  ;;  %vm269_vm0 = vcmask 261120   ;;  %v146_v26 = vld [vmem:[%s784_s0 + $0x1] sm:$0x1]  ;;  %v145_v30 = vld [vmem:[%s784_s0] sm:$0x1]  ;;  %v356_v41 = vlaneseq  ;;  %p595_p0 = scmp.lt.s32.totalorder %s589_s17, %s786_s2 }
  0x14   : > { %s445_s22 = sshll.u32 %s794_s21, 2  ;;  %v148_v27 = vpack.c.bf16 %v146_v26, %v146_v26  ;;  %v147_v31 = vpack.c.bf16 %v145_v30, %v145_v30  ;;  %vm186_vm1 = vcmask 1041409   ;;  %vm350_vm2 = vcmask 1040384   ;;  %s590_s21 = scalar_lea.hbm %s589_s17, 4 }
  0x15   : > { %s708_s25 = scalar_lea.vmem %s785_s1, %s445_s22  ;;  %vm358_vm3 = vcmp.lt.s32.totalorder %v356_v41, 256  ;;  %p591_p11 = scmp.ne.s32.totalorder %s589_s17, %s590_s21 }
  0x16   : > { %v523_v0 = vld [vmem:[%s708_s25 + $0x38] sm:$0xff]  ;;  %v522_v4 = vld [vmem:[%s708_s25 + $0x30] sm:$0xff]  ;;  %v521_v8 = vld [vmem:[%s708_s25 + $0x28] sm:$0xff]  ;;  %v184_v32 = vunpack.c.l.b16 %v148_v27  ;;  %v183_v35 = vunpack.c.l.b16 %v147_v31  ;;  %s594_s24 = scalar_lea.hbm %s786_s2, 8 }
  0x17   : > { %v531_v1 = vld [vmem:[%s708_s25 + $0x78] sm:$0xff]  ;;  %v295_v2 = vsel %vm269_vm0, %v523_v0, 0  ;;  %v530_v5 = vld [vmem:[%s708_s25 + $0x70] sm:$0xff]  ;;  %v292_v6 = vsel %vm269_vm0, %v522_v4, 0  ;;  %v529_v9 = vld [vmem:[%s708_s25 + $0x68] sm:$0xff]  ;;  %v289_v10 = vsel %vm269_vm0, %v521_v8, 0  ;;  %p592_p12 = pnand %p591_p11, %p694_p5  ;;  %p596_p1 = scmp.lt.s32.totalorder %s594_s24, %s590_s21 }
  0x18   : > { %v319_v3 = vsel %vm269_vm0, %v531_v1, 0  ;;  %321 = vmatpush.bf16.xpose.msra.mxu0 %v295_v2  ;;  %v316_v7 = vsel %vm269_vm0, %v530_v5, 0  ;;  %v313_v11 = vsel %vm269_vm0, %v529_v9, 0  ;;  %v520_v12 = vld [vmem:[%s708_s25 + $0x20] sm:$0xff]  ;;  %v519_v16 = vld [vmem:[%s708_s25 + $0x18] sm:$0xff]  ;;  %v518_v20 = vld [vmem:[%s708_s25 + $0x10] sm:$0xff] }
  0x19   : > { %334 = vmatpush.bf16.xpose.msra.mxu1 %v319_v3  ;;  %v528_v13 = vld [vmem:[%s708_s25 + $0x60] sm:$0xff]  ;;  %v286_v14 = vsel %vm269_vm0, %v520_v12, 0  ;;  %v527_v17 = vld [vmem:[%s708_s25 + $0x58] sm:$0xff]  ;;  %v283_v18 = vsel %vm269_vm0, %v519_v16, 0  ;;  %v526_v21 = vld [vmem:[%s708_s25 + $0x50] sm:$0xff]  ;;  %v280_v22 = vsel %vm269_vm0, %v518_v20, 0  ;;  %p593_p13 = pneg %p592_p12  ;;  %p597_p2 = por %p596_p1, %p595_p0 }
  0x1a   : > { %v310_v15 = vsel %vm269_vm0, %v528_v13, 0  ;;  %v307_v19 = vsel %vm269_vm0, %v527_v17, 0  ;;  %v304_v23 = vsel %vm269_vm0, %v526_v21, 0  ;;  %v517_v24 = vld [vmem:[%s708_s25 + $0x8] sm:$0xff]  ;;  %v516_v33 = vld [vmem:[%s708_s25] sm:$0xff]  ;;  %v185_v36 = vrot.slane %v184_v32, 7 }
  0x1b   : > { %v525_v25 = vld [vmem:[%s708_s25 + $0x48] sm:$0xff]  ;;  %v277_v28 = vsel %vm269_vm0, %v517_v24, 0  ;;  %v524_v34 = vld [vmem:[%s708_s25 + $0x40] sm:$0xff]  ;;  %v274_v37 = vsel %vm269_vm0, %v516_v33, 0  ;;  %p598_p3 = pnand %p597_p2, %p593_p13 }
  0x1c   : > { %v301_v29 = vsel %vm269_vm0, %v525_v25, 0  ;;  %v298_v38 = vsel %vm269_vm0, %v524_v34, 0  ;;  %v187_v39 = vsel %vm186_vm1, %v185_v36, %v183_v35 }
  0x1d   : > { %v188_v40 = vpack.c.b16 %v187_v39, %v187_v39 }
  0x20   : > { %322 = vmatpush.bf16.xpose.msra.mxu0 %v292_v6 }
  0x21   : > { %335 = vmatpush.bf16.xpose.msra.mxu1 %v316_v7 }
  0x28   : > { %323 = vmatpush.bf16.xpose.msra.mxu0 %v289_v10 }
  0x29   : > { %336 = vmatpush.bf16.xpose.msra.mxu1 %v313_v11 }
  0x30   : > { %324 = vmatpush.bf16.xpose.msra.mxu0 %v286_v14 }
  0x31   : > { %337 = vmatpush.bf16.xpose.msra.mxu1 %v310_v15 }
  0x38   : > { %325 = vmatpush.bf16.xpose.msra.mxu0 %v283_v18 }
  0x39   : > { %338 = vmatpush.bf16.xpose.msra.mxu1 %v307_v19 }
  0x40   : > { %326 = vmatpush.bf16.xpose.msra.mxu0 %v280_v22 }
  0x41   : > { %339 = vmatpush.bf16.xpose.msra.mxu1 %v304_v23 }
  0x48   : > { %327 = vmatpush.bf16.xpose.msra.mxu0 %v277_v28 }
  0x49   : > { %340 = vmatpush.bf16.xpose.msra.mxu1 %v301_v29 }
  0x50   : > { %328 = vmatpush.bf16.xpose.msra.mxu0 %v274_v37 }
  0x51   : > { %341 = vmatpush.bf16.xpose.msra.mxu1 %v298_v38 }
  0x57   : > { %510 = vmatmul.msk.bf16.vlgmr.msra.gmra.mxu0 %vm269_vm0, %v188_v40 }
  0x58   : > { %511 = vmatmul.msk.bf16.vlgmr.msra.gmra.mxu1 %vm269_vm0, %v188_v40 }
  0xd4   : > { %v330_v42 = vpop.f32.mrf.mxu0 }
  0xd5   : > { %v343_v43 = vpop.f32.mrf.mxu1 }
  0xd6   : > { %v349_v44 = vrot.slane %v343_v43, 7 }
  0xd8   : > { %v351_v45 = vsel %vm350_vm2, %v330_v42, %v349_v44  ;;  %v352_v46 = vsel %vm186_vm1, %v330_v42, %v349_v44 }
  0xd9   : > { %v353_v47 = vrot.slane %v352_v46, 1  ;;  %360 = vst.msk [vmem:[%s137_s8] sm:$0x3] %vm358_vm3, %v351_v45 }
  0xdb   : > { %361 = vst.msk [vmem:[%s137_s8 + $0x2] sm:$0x3] %vm358_vm3, %v353_v47 }
  0xdc   : > { %601 = shalt.err (!%p598_p3)
}
  0xdd   : > { %s638_s27 = smov 32   ;;  %s639_s28 = smov 64   ;;  %v332_v48 = vpop.f32.mrf.mxu0  ;;  %v345_v49 = vpop.f32.mrf.mxu1 }
  0xde   : > { %s640_s29 = smov 2  }
  0xdf   : > { %532 = dma.vmem_to_hbm [thread:$0]  (%p694_p5), %s375_s14, 64, %s377_s16, %s363_s13, %s638_s27, %s639_s28, %s640_s29  }
  0xe0 PF: > { %p538_p4 = scmp.ge.s32.totalorder %s636_s12, 2  ;;  %s391_s30 = sand.u32 1, %s624_s9  }
  0xe1   : > { %s392_s3 = scalar_lea.sflag [#allocation3], %s391_s30 }
  0xe2   : > { %p535_p7 = pnand %p538_p4, %p698_p6 }
  0xe4   : > { %p536_p8 = pneg %p535_p7 }
  0xe6   : > { %619 = dma.done.wait (%p536_p8), %s392_s3, 64  }
  0xe7   : > { %621 = vsyncadd (%p536_p8), %s392_s3, 4294967232  ;;  %p12_p5 = scmp.ge.s32.totalorder %s681_s15, 4   ;;  %s789_s9 = smov %s628_s10 }
  0xe8   : > { %s790_s10 = smov %s632_s11  ;;  %s791_s11 = smov %s692_s18 }
  0xe9   : > { %s792_s12 = smov %s681_s15  ;;  %14 = sbr.rel (!%p12_p5) target bundleno = 3 (0x3), region = 63 }
  0xee   :  { %398 = vsyncpa [#allocation3], 1 }
  0xef   :  { %400 = vsyncpa [#allocation3 + $0x1], 1 }

// kernel: gpt_forward.2
= control target key start
LH: loop header
LB: loop body
LE: loop exit
PB: predicated region body
PF: predicated region fallthrough
CT: control target
= control target key end

     0   :  { %s2134_s18 = smov 0   ;;  %s2468_s0 = inlined_call_operand.vmem [shape: f32[16,32], index: 0, kind: input, shape index: {}]   ;;  %s2469_s1 = inlined_call_operand.vmem [shape: f32[2,1,32], index: 1, kind: input, shape index: {}]   ;;  %s2470_s2 = inlined_call_operand.vmem [shape: f32[2,1,32], index: 2, kind: input, shape index: {}]   ;;  %s2471_s3 = inlined_call_operand.vmem [shape: bf16[2,32,96], index: 3, kind: input, shape index: {}]   ;;  %s2472_s4 = inlined_call_operand.vmem [shape: f32[2,1,96], index: 4, kind: input, shape index: {}]   ;;  %s2473_s5 = inlined_call_operand.vmem [shape: bf16[2,32,32], index: 5, kind: input, shape index: {}]   ;;  %s2474_s6 = inlined_call_operand.vmem [shape: f32[2,1,32], index: 6, kind: input, shape index: {}]   ;;  %s2475_s7 = inlined_call_operand.vmem [shape: f32[2,1,32], index: 7, kind: input, shape index: {}]   ;;  %s2476_s8 = inlined_call_operand.vmem [shape: f32[2,1,32], index: 8, kind: input, shape index: {}]   ;;  %s2477_s9 = inlined_call_operand.vmem [shape: bf16[2,32,128], index: 9, kind: input, shape index: {}]   ;;  %s2478_s10 = inlined_call_operand.vmem [shape: f32[2,1,128], index: 10, kind: input, shape index: {}]   ;;  %s2479_s11 = inlined_call_operand.vmem [shape: bf16[2,128,32], index: 11, kind: input, shape index: {}]   ;;  %s2480_s12 = inlined_call_operand.vmem [shape: f32[2,1,32], index: 12, kind: input, shape index: {}]   ;;  %s2481_s13 = inlined_call_operand.vmem [shape: f32[1,32], index: 13, kind: input, shape index: {}]   ;;  %s2482_s14 = inlined_call_operand.vmem [shape: f32[1,32], index: 14, kind: input, shape index: {}]   ;;  %s2483_s15 = inlined_call_operand.vmem [shape: f32[2,1,32], index: 15, kind: output, shape index: {}]  }
   0x1 LB: > { %s1746_s19 = sadd.s32 4294967295, %s2043_s18   ;;  %p1750_p0 = scmp.ge.s32.totalorder %s2043_s18, 1  ;;  %s2043_s18 = sphi %s2134_s18, %s25_s18  }
   0x2   : > { %p436_p1 = scmp.lt.s32.totalorder %s2043_s18, 3 }
   0x4   : > { %p437_p2 = pnand %p1750_p0, %p436_p1 }
   0x5   : > { %p481_p3 = scmp.lt.s32.totalorder (!%p437_p2), %s1746_s19, 1  ;;  %s2046_s21 = smov (!%p437_p2), 104  }
   0x6   : > { %440 = sbr.rel (%p437_p2) target bundleno = 4291 (0x10c3), region = 80  ;;  %s2047_s22 = smov (!%p437_p2), 120  }
   0x7   : > { %s2049_s24 = smov (!%p437_p2), 96   ;;  %s2050_s25 = smov (!%p437_p2), 64  }
   0x8   : > { %s2485_s26 = smov (!%p437_p2), 8   ;;  %s2484_s27 = smov (!%p437_p2), 24  }
   0x9   : > { %s2486_s28 = smov (!%p437_p2), 16  }
   0xb   : > { %s2493_s19 = smov (!%p481_p3, %s1746_s19), 1  ;;  %vm497_vm0 = vcmask 261120   ;;  %v2045_v2 = vmov 32.0   ;;  %v1927_v14 = vld [vmem:[%s2471_s3 + $0x8] sm:$0xff]  ;;  %v1926_v15 = vld [vmem:[%s2471_s3] sm:$0xff]  ;;  %vm599_vm5 = vcmask 64512  }
   0xc   : > { %s1751_s20 = sshll.u32 %s2493_s19, 3  ;;  %1989 = vrcp.f32 %v2045_v2  ;;  %565 = vmatpush.bf16.msra.mxu1 %v1927_v14  ;;  %v1971_v25 = vld [vmem:[%s2469_s1] ss:$0 sm:$0xff]  ;;  %vm750_vm7 = vcmask 1043456   ;;  %vm843_vm8 = vcmask 130048   ;;  %vm845_vm9 = vcmask 195584  }
   0xd   : > { %s484_s23 = scalar_lea.vmem %s2468_s0, %s1751_s20  ;;  %v1972_v28 = vld [vmem:[%s2470_s2] ss:$0 sm:$0xff] }
   0xe   : > { %v2148_v0 = vld [vmem:[%s484_s23] sm:$0xff]  ;;  %s2048_s23 = smov 112  }
   0xf   : > { %v498_v1 = vsel %vm497_vm0, %v2148_v0, 0.0  ;;  %v1973_v32 = vld [vmem:[%s2472_s4] ss:$0 sm:$0xff] }
  0x10   : > { %499 = vadd.xlane.f32.xlu0 %v498_v1  ;;  %566 = vmatpush.bf16.msra.mxu1 %v1926_v15 }
  0x12   : > { %v1990_v3 = vpop.eup %1989 }
  0x13   : > { %v502_v4 = vmul.f32 32.0, %v1990_v3  ;;  %vm506_vm1 = vweird.f32 %v1990_v3 }
  0x15   : > { %v503_v5 = vsub.f32 1.0, %v502_v4  ;;  %v490_v4 = vlaneseq }
  0x17   : > { %v504_v6 = vmul.f32 %v1990_v3, %v503_v5  ;;  %v491_v5 = vshrl.u32 %v490_v4, 7 }
  0x19   : > { %v505_v7 = vadd.f32 %v1990_v3, %v504_v6  ;;  %v493_v6 = vand.u32 127, %v490_v4 }
  0x1b   : > { %v2152_v8 = vsel %vm506_vm1, %v1990_v3, %v505_v7  ;;  %vm2198_vm6 = vcmp.le.s32.totalorder %v493_v6, %v491_v5 }
  0x83   : > { %v500_v9 = vpop.xlane.xlu0 %499 }
  0x84   : > { %v508_v10 = vmul.f32 %v2152_v8, %v500_v9 }
  0x86   : > { %v509_v11 = vsub.f32 %v2148_v0, %v508_v10 }
  0x88   : > { %v510_v12 = vmul.f32 %v509_v11, %v509_v11 }
  0x8a   : > { %v511_v13 = vsel %vm497_vm0, %v510_v12, 0.0 }
  0x8b   : > { %512 = vadd.xlane.f32.xlu0 %v511_v13 }
  0xfe   : > { %v513_v16 = vpop.xlane.xlu0 %512 }
  0xff   : > { %v514_v17 = vmul.f32 %v513_v16, %v2152_v8 }
 0x101   : > { %v515_v18 = vadd.f32 1e-05, %v514_v17 }
 0x103   : > { %1991 = vrsqrt.f32 %v515_v18  ;;  %vm522_vm3 = vweird.f32 %v515_v18 }
 0x109   : > { %v1992_v19 = vpop.eup %1991 }
 0x10a   : > { %v517_v20 = vmul.f32 %v1992_v19, %v515_v18  ;;  %vm523_vm2 = vweird.f32 %v1992_v19 }
 0x10b   : > { %vm524_vm4 = vmor %vm522_vm3, %vm523_vm2 }
 0x10c   : > { %v518_v21 = vmul.f32 %v1992_v19, %v517_v20 }
 0x10e   : > { %v519_v22 = vmul.f32 0.5, %v518_v21 }
 0x110   : > { %v520_v23 = vsub.f32 1.5, %v519_v22 }
 0x112   : > { %v521_v24 = vmul.f32 %v1992_v19, %v520_v23 }
 0x114   : > { %v525_v26 = vsel %vm524_vm4, %v1992_v19, %v521_v24 }
 0x115   : > { %v526_v27 = vmul.f32 %v525_v26, %v509_v11 }
 0x117   : > { %v530_v29 = vmul.f32 %v1971_v25, %v526_v27 }
 0x119   : > { %v534_v30 = vadd.f32 %v1972_v28, %v530_v29 }
 0x11b   : > { %v535_v31 = vpack.c.bf16 %v534_v30, %v534_v30 }
 0x11d   : > { %1760 = vmatmul.msk.bf16.vlgmr.msra.gmra.mxu1 %vm497_vm0, %v535_v31 }
 0x19a   : > { %v568_v33 = vpop.f32.mrf.mxu1 }
 0x19b   : > { %v569_v34 = vadd.f32 %v1973_v32, %v568_v33 }
 0x19d   : > { %579 = vrot.lane.b32.xlu2 %v569_v34, %s2046_s21  ;;  %573 = vrot.lane.b32.xlu1 %v569_v34, %s2047_s22  ;;  %v590_v44 = vpack.c.bf16 %v569_v34, %v569_v34  ;;  %v582_v61 = vmul.f32 0.35355338, %v569_v34 }
 0x19f   : > { %v595_v47 = vunpack.c.l.b16 %v590_v44  ;;  %v586_v62 = vpack.c.bf16 %v582_v61, %v582_v61 }
 0x1a1   : > { %v2184_v50 = vpack.c.b16 %v595_v47, %v595_v47 }
 0x1a2   : > { %v570_v35 = vpop.f32.mrf.mxu1 }
 0x1a5   : > { %576 = vrot.lane.b32.xlu1 %v569_v34, %s2048_s23 }
 0x1f7   : > { %v580_v36 = vpop.permute.xlu2 %579 }
 0x1f8   : > { %v593_v37 = vpack.c.bf16 %v580_v36, %v580_v36  ;;  %v585_v55 = vmul.f32 0.35355338, %v580_v36 }
 0x1fa   : > { %v668_v38 = vunpack.c.l.b16 %v593_v37  ;;  %v589_v57 = vpack.c.bf16 %v585_v55, %v585_v55 }
 0x1fc   : > { %v2177_v39 = vpack.c.b16 %v668_v38, %v668_v38 }
 0x1fe   : > { %670 = vrot.lane.b32.xlu1 %v2177_v39, %s2049_s24 }
 0x20f   : > { %v574_v40 = vpop.permute.xlu1 %573 }
 0x210   : > { %v591_v41 = vpack.c.bf16 %v574_v40, %v574_v40  ;;  %v583_v56 = vmul.f32 0.35355338, %v574_v40 }
 0x212   : > { %v620_v42 = vunpack.c.l.b16 %v591_v41  ;;  %v587_v58 = vpack.c.bf16 %v583_v56, %v583_v56 }
 0x214   : > { %v621_v43 = vpack.c.b16 %v620_v42, %v620_v42 }
 0x216   : > { %622 = vrot.lane.b32.xlu2 %v621_v43, %s2049_s24 }
 0x217   : > { %v577_v45 = vpop.permute.xlu1 %576 }
 0x218   : > { %v592_v46 = vpack.c.bf16 %v577_v45, %v577_v45  ;;  %v584_v2 = vmul.f32 0.35355338, %v577_v45 }
 0x21a   : > { %v644_v48 = vunpack.c.l.b16 %v592_v46  ;;  %v588_v3 = vpack.c.bf16 %v584_v2, %v584_v2 }
 0x21c   : > { %v2182_v49 = vpack.c.b16 %v644_v48, %v644_v48 }
 0x21e   : > { %646 = vrot.lane.b32.xlu0 %v2182_v49, %s2049_s24  ;;  %597 = vrot.lane.b32.xlu2 %v2184_v50, %s2049_s24 }
 0x270   : > { %v623_v51 = vpop.permute.xlu2 %622  ;;  %v671_v52 = vpop.permute.xlu1 %670 }
 0x271   : > { %v628_v53 = vsel %vm599_vm5, %v623_v51, 0  ;;  %v676_v54 = vsel %vm599_vm5, %v671_v52, 0 }
 0x272   : > { %637 = vmatpush.bf16.xpose.msra.mxu2 %v628_v53  ;;  %685 = vmatpush.bf16.xpose.msra.mxu0 %v676_v54 }
 0x278   : > { %v598_v59 = vpop.permute.xlu2 %597 }
 0x279   : > { %1762 = vmatmul.msk.bf16.vlgmr.msra.gmra.mxu2 %vm599_vm5, %v587_v58  ;;  %1764 = vmatmul.msk.bf16.vlgmr.msra.gmra.mxu0 %vm599_vm5, %v589_v57  ;;  %v604_v60 = vsel %vm599_vm5, %v598_v59, 0 }
 0x27a   : > { %613 = vmatpush.bf16.xpose.msrb.mxu1 %v604_v60 }
 0x281   : > { %1761 = vmatmul.msk.bf16.vlgmr.msrb.gmra.mxu1 %vm599_vm5, %v586_v62 }
 0x290   : > { %v647_v63 = vpop.permute.xlu0 %646 }
 0x291   : > { %v652_v1 = vsel %vm599_vm5, %v647_v63, 0 }
 0x292   : > { %661 = vmatpush.bf16.xpose.msra.mxu3 %v652_v1 }
 0x299   : > { %1763 = vmatmul.msk.bf16.vlgmr.msra.gmra.mxu3 %vm599_vm5, %v588_v3 }
 0x2f6   : > { %v687_v9 = vpop.f32.mrf.mxu0 }
 0x2f7   : > { %v696_v10 = vsel %vm2198_vm6, %v687_v9, -1e+30 }
 0x2f8   : > { %v706_v11 = vsel %vm599_vm5, %v696_v10, -inf }
 0x2f9   : > { %707 = vmax.xlane.f32.xlu0 %v706_v11 }
 0x2fc   : > { %v639_v12 = vpop.f32.mrf.mxu2 }
 0x2fd   : > { %v694_v13 = vsel %vm2198_vm6, %v639_v12, -1e+30 }
 0x2fe   : > { %v615_v14 = vpop.f32.mrf.mxu1  ;;  %v689_v15 = vpop.f32.mrf.mxu0  ;;  %v700_v16 = vsel %vm599_vm5, %v694_v13, -inf }
 0x2ff   : > { %701 = vmax.xlane.f32.xlu1 %v700_v16  ;;  %v693_v22 = vsel %vm2198_vm6, %v615_v14, -1e+30  ;;  %v1929_v16 = vld [vmem:[%s2473_s5 + $0x8] sm:$0xff] }
 0x300   : > { %v697_v24 = vsel %vm599_vm5, %v693_v22, -inf }
 0x304   : > { %v641_v17 = vpop.f32.mrf.mxu2 }
 0x305   : > { %v1928_v17 = vld [vmem:[%s2473_s5] sm:$0xff] }
 0x306   : > { %v617_v18 = vpop.f32.mrf.mxu1 }
 0x30d   : > { %767 = vrot.lane.b32.xlu0 %v621_v43, %s2050_s25 }
 0x31c   : > { %v663_v19 = vpop.f32.mrf.mxu3 }
 0x31d   : > { %v695_v20 = vsel %vm2198_vm6, %v663_v19, -1e+30 }
 0x31e   : > { %v703_v21 = vsel %vm599_vm5, %v695_v20, -inf }
 0x31f   : > { %704 = vmax.xlane.f32.xlu2 %v703_v21 }
 0x324   : > { %v665_v23 = vpop.f32.mrf.mxu3 }
 0x327   : > { %698 = vmax.xlane.f32.xlu2 %v697_v24 }
 0x36c   : > { %v708_v25 = vpop.xlane.xlu0 %707 }
 0x36d   : > { %v712_v26 = vsub.f32 %v696_v10, %v708_v25  ;;  %v1974_v25 = vld [vmem:[%s2474_s6] ss:$0 sm:$0xff] }
 0x36f   : > { %v719_v27 = vmul.f32 1.442695, %v712_v26 }
 0x371   : > { %1993 = vpow2.f32 %v719_v27 }
 0x372   : > { %v702_v28 = vpop.xlane.xlu1 %701 }
 0x373   : > { %v710_v29 = vsub.f32 %v694_v13, %v702_v28 }
 0x375   : > { %v715_v30 = vmul.f32 1.442695, %v710_v29 }
 0x377   : > { %v1994_v31 = vpop.eup %1993  ;;  %1995 = vpow2.f32 %v715_v30 }
 0x378   : > { %v730_v32 = vsel %vm599_vm5, %v1994_v31, 0.0 }
 0x379   : > { %731 = vadd.xlane.f32.xlu1 %v730_v32 }
 0x37d   : > { %v1996_v33 = vpop.eup %1995 }
 0x37e   : > { %v724_v36 = vsel %vm599_vm5, %v1996_v33, 0.0 }
 0x37f   : > { %v768_v34 = vpop.permute.xlu0 %767 }
 0x380   : > { %v773_v35 = vsel %vm750_vm7, %v768_v34, 0 }
 0x381   : > { %782 = vmatpush.bf16.msrb.mxu2 %v773_v35  ;;  %725 = vadd.xlane.f32.xlu1 %v724_v36  ;;  %v1931_v36 = vld [vmem:[%s2477_s9 + $0x8] sm:$0xff] }
 0x385   : > { %947 = vmatpush.bf16.msra.mxu2 %v1931_v36 }
 0x392   : > { %v705_v37 = vpop.xlane.xlu2 %704 }
 0x393   : > { %v711_v38 = vsub.f32 %v695_v20, %v705_v37 }
 0x395   : > { %v717_v40 = vmul.f32 1.442695, %v711_v38 }
 0x397   : > { %1997 = vpow2.f32 %v717_v40 }
 0x39a   : > { %809 = vrot.lane.b32.xlu1 %v2177_v39, %s2050_s25  ;;  %v699_v41 = vpop.xlane.xlu2 %698 }
 0x39b   : > { %v709_v42 = vsub.f32 %v693_v22, %v699_v41 }
 0x39d   : > { %v1998_v43 = vpop.eup %1997  ;;  %v713_v44 = vmul.f32 1.442695, %v709_v42 }
 0x39e   : > { %v727_v45 = vsel %vm599_vm5, %v1998_v43, 0.0 }
 0x39f   : > { %1999 = vpow2.f32 %v713_v44  ;;  %728 = vadd.xlane.f32.xlu2 %v727_v45 }
 0x3a5   : > { %v2000_v46 = vpop.eup %1999 }
 0x3a6   : > { %v721_v47 = vsel %vm599_vm5, %v2000_v46, 0.0 }
 0x3a7   : > { %722 = vadd.xlane.f32.xlu0 %v721_v47  ;;  %v1975_v47 = vld [vmem:[%s2475_s7] ss:$0 sm:$0xff] }
 0x3b7   : > { %788 = vrot.lane.b32.xlu2 %v2182_v49, %s2050_s25 }
 0x3bf   : > { %745 = vrot.lane.b32.xlu2 %v2184_v50, %s2050_s25 }
 0x3ec   : > { %v732_v48 = vpop.xlane.xlu1 %731 }
 0x3f4   : > { %v726_v39 = vpop.xlane.xlu1 %725 }
 0x3f5   : > { %2001 = vrcp.f32 %v726_v39 }
 0x3f6   : > { %2003 = vrcp.f32 %v732_v48 }
 0x3fb   : > { %v2002_v51 = vpop.eup %2001 }
 0x3fc   : > { %v738_v52 = vmul.f32 %v2002_v51, %v1996_v33  ;;  %v2004_v54 = vpop.eup %2003  ;;  %v1976_v51 = vld [vmem:[%s2476_s8] ss:$0 sm:$0xff] }
 0x3fd   : > { %v740_v55 = vmul.f32 %v2004_v54, %v1994_v31 }
 0x3fe   : > { %v742_v53 = vpack.c.bf16 %v738_v52, %v738_v52 }
 0x3ff   : > { %v744_v58 = vpack.c.bf16 %v740_v55, %v740_v55  ;;  %v1939_v55 = vld [vmem:[%s2479_s11 + $0x38] sm:$0xff] }
 0x400   : > { %1766 = vmatmul.msk.bf16.vlgmr.msrb.gmra.mxu2 %vm599_vm5, %v742_v53 }
 0x40c   : > { %v810_v56 = vpop.permute.xlu1 %809 }
 0x40d   : > { %v815_v57 = vsel %vm750_vm7, %v810_v56, 0  ;;  %v1938_v56 = vld [vmem:[%s2479_s11 + $0x30] sm:$0xff] }
 0x40e   : > { %824 = vmatpush.bf16.msrb.mxu0 %v815_v57  ;;  %v1977_v57 = vld [vmem:[%s2478_s10] ss:$0 sm:$0xff] }
 0x411   : > { %1768 = vmatmul.msk.bf16.vlgmr.msrb.gmra.mxu0 %vm599_vm5, %v744_v58 }
 0x412   : > { %v729_v49 = vpop.xlane.xlu2 %728 }
 0x413   : > { %2005 = vrcp.f32 %v729_v49  ;;  %v1937_v49 = vld [vmem:[%s2479_s11 + $0x28] sm:$0xff] }
 0x419   : > { %v2006_v50 = vpop.eup %2005 }
 0x41a   : > { %v739_v59 = vmul.f32 %v2006_v50, %v1998_v43  ;;  %v723_v60 = vpop.xlane.xlu0 %722  ;;  %v789_v61 = vpop.permute.xlu2 %788 }
 0x41b   : > { %2007 = vrcp.f32 %v723_v60  ;;  %v794_v62 = vsel %vm750_vm7, %v789_v61, 0  ;;  %v1936_v60 = vld [vmem:[%s2479_s11 + $0x20] sm:$0xff] }
 0x41c   : > { %803 = vmatpush.bf16.msrb.mxu3 %v794_v62  ;;  %v743_v63 = vpack.c.bf16 %v739_v59, %v739_v59 }
 0x41f   : > { %1767 = vmatmul.msk.bf16.vlgmr.msrb.gmra.mxu3 %vm599_vm5, %v743_v63 }
 0x420   : > { %1067 = vmatpush.bf16.msra.mxu3 %v1939_v55 }
 0x421   : > { %v2008_v1 = vpop.eup %2007 }
 0x422   : > { %v737_v2 = vmul.f32 %v2008_v1, %v2000_v46  ;;  %v746_v3 = vpop.permute.xlu2 %745  ;;  %v1935_v1 = vld [vmem:[%s2479_s11 + $0x18] sm:$0xff] }
 0x423   : > { %v752_v4 = vsel %vm750_vm7, %v746_v3, 0 }
 0x424   : > { %v741_v5 = vpack.c.bf16 %v737_v2, %v737_v2  ;;  %761 = vmatpush.bf16.msra.mxu1 %v752_v4  ;;  %1068 = vmatpush.bf16.msra.mxu3 %v1938_v56 }
 0x427   : > { %1765 = vmatmul.msk.bf16.vlgmr.msra.gmra.mxu1 %vm599_vm5, %v741_v5 }
 0x428   : > { %877 = vmatpush.bf16.msrb.mxu1 %v1929_v16  ;;  %1069 = vmatpush.bf16.msra.mxu3 %v1937_v49 }
 0x42c   : > { %878 = vmatpush.bf16.msrb.mxu1 %v1928_v17  ;;  %1070 = vmatpush.bf16.msra.mxu3 %v1936_v60  ;;  %v1932_v17 = vld [vmem:[%s2479_s11] sm:$0xff] }
 0x430   : > { %1071 = vmatpush.bf16.msra.mxu3 %v1935_v1 }
 0x483   : > { %v784_v6 = vpop.f32.mrf.mxu2 }
 0x484   : > { %831 = vrot.lane.b32.xlu1 %v784_v6, %s2485_s26  ;;  %v1934_v6 = vld [vmem:[%s2479_s11 + $0x10] sm:$0xff] }
 0x485   : > { %1072 = vmatpush.bf16.msra.mxu3 %v1934_v6 }
 0x48b   : > { %v786_v9 = vpop.f32.mrf.mxu2 }
 0x48e   : > { %v826_v10 = vpop.f32.mrf.mxu0 }
 0x48f   : > { %839 = vrot.lane.b32.xlu1 %v826_v10, %s2484_s27 }
 0x496   : > { %v828_v11 = vpop.f32.mrf.mxu0 }
 0x4a2   : > { %v805_v12 = vpop.f32.mrf.mxu3 }
 0x4a3   : > { %835 = vrot.lane.b32.xlu2 %v805_v12, %s2486_s28 }
 0x4a4   : > { %v763_v13 = vpop.f32.mrf.mxu1 }
 0x4aa   : > { %v807_v14 = vpop.f32.mrf.mxu3 }
 0x4ac   : > { %v765_v15 = vpop.f32.mrf.mxu1 }
 0x4f6   : > { %v832_v18 = vpop.permute.xlu1 %831 }
 0x4f7   : > { %v842_v20 = vsel %vm599_vm5, %v763_v13, %v832_v18  ;;  %v1933_v13 = vld [vmem:[%s2479_s11 + $0x8] sm:$0xff] }
 0x4f8   : > { %1073 = vmatpush.bf16.msra.mxu3 %v1933_v13 }
 0x4fc   : > { %1074 = vmatpush.bf16.msra.mxu3 %v1932_v17 }
 0x4fd   : > { %v836_v19 = vpop.permute.xlu2 %835 }
 0x4fe   : > { %v844_v21 = vsel %vm843_vm8, %v842_v20, %v836_v19 }
 0x501   : > { %v840_v22 = vpop.permute.xlu1 %839 }
 0x502   : > { %v846_v23 = vsel %vm845_vm9, %v844_v21, %v840_v22 }
 0x503   : > { %v847_v24 = vpack.c.bf16 %v846_v23, %v846_v23 }
 0x505   : > { %1777 = vmatmul.msk.bf16.vlgmr.msrb.gmra.mxu1 %vm497_vm0, %v847_v24 }
 0x582   : > { %v880_v26 = vpop.f32.mrf.mxu1 }
 0x583   : > { %v881_v27 = vadd.f32 %v1974_v25, %v880_v26 }
 0x585   : > { %v2250_v28 = vadd.f32 %v881_v27, %v2148_v0  ;;  %v1930_v0 = vld [vmem:[%s2477_s9] sm:$0xff] }
 0x586   : > { %948 = vmatpush.bf16.msra.mxu2 %v1930_v0 }
 0x587   : > { %v887_v29 = vsel %vm497_vm0, %v2250_v28, 0.0 }
 0x588   : > { %888 = vadd.xlane.f32.xlu2 %v887_v29 }
 0x58a   : > { %v882_v30 = vpop.f32.mrf.mxu1 }
 0x5fb   : > { %v889_v31 = vpop.xlane.xlu2 %888 }
 0x5fc   : > { %v890_v32 = vmul.f32 %v889_v31, %v2152_v8 }
 0x5fe   : > { %v891_v33 = vsub.f32 %v2250_v28, %v890_v32 }
 0x600   : > { %v892_v34 = vmul.f32 %v891_v33, %v891_v33 }
 0x602   : > { %v893_v35 = vsel %vm497_vm0, %v892_v34, 0.0 }
 0x603   : > { %894 = vadd.xlane.f32.xlu1 %v893_v35 }
 0x676   : > { %v895_v37 = vpop.xlane.xlu1 %894 }
 0x677   : > { %v896_v38 = vmul.f32 %v895_v37, %v2152_v8 }
 0x679   : > { %v897_v40 = vadd.f32 1e-05, %v896_v38 }
 0x67b   : > { %2009 = vrsqrt.f32 %v897_v40  ;;  %vm904_vm11 = vweird.f32 %v897_v40 }
 0x681   : > { %v2010_v41 = vpop.eup %2009 }
 0x682   : > { %v899_v42 = vmul.f32 %v2010_v41, %v897_v40  ;;  %vm905_vm10 = vweird.f32 %v2010_v41 }
 0x683   : > { %vm906_vm12 = vmor %vm904_vm11, %vm905_vm10  ;;  %vm1667_vm11 = vcmask 261127  }
 0x684   : > { %v900_v43 = vmul.f32 %v2010_v41, %v899_v42 }
 0x686   : > { %v901_v44 = vmul.f32 0.5, %v900_v43 }
 0x688   : > { %v902_v45 = vsub.f32 1.5, %v901_v44 }
 0x68a   : > { %v903_v46 = vmul.f32 %v2010_v41, %v902_v45  ;;  %v1978_v45 = vld [vmem:[%s2480_s12] ss:$0 sm:$0xff] }
 0x68c   : > { %v907_v48 = vsel %vm906_vm12, %v2010_v41, %v903_v46 }
 0x68d   : > { %v908_v39 = vmul.f32 %v907_v48, %v891_v33 }
 0x68f   : > { %v912_v52 = vmul.f32 %v1975_v47, %v908_v39 }
 0x691   : > { %v916_v53 = vadd.f32 %v1976_v51, %v912_v52 }
 0x693   : > { %v917_v54 = vpack.c.bf16 %v916_v53, %v916_v53 }
 0x695   : > { %1786 = vmatmul.msk.bf16.vlgmr.msra.gmra.mxu2 %vm497_vm0, %v917_v54 }
 0x718   : > { %v950_v58 = vpop.f32.mrf.mxu2 }
 0x719   : > { %v951_v50 = vadd.f32 %v1977_v57, %v950_v58  ;;  %v1941_v57 = vld [vmem:[%s2471_s3 + $0x18] sm:$0xff] }
 0x71a   : > { %1147 = vmatpush.bf16.msra.mxu0 %v1941_v57 }
 0x71b   : > { %v955_v59 = vmul.f32 0.70710677, %v951_v50  ;;  %v954_v41 = vmul.f32 0.5, %v951_v50 }
 0x71d   : > { %v956_v61 = vmul.f32 %v955_v59, %v955_v59 }
 0x71f   : > { %v957_v62 = vmin.f32 %v956_v61, 16.0 }
 0x720   : > { %v952_v63 = vpop.f32.mrf.mxu2 }
 0x721   : > { %v958_v2 = vmul.f32 2.1237322e-06, %v957_v62  ;;  %v969_v3 = vmul.f32 3.8918573e-05, %v957_v62 }
 0x723   : > { %v959_v4 = vadd.f32 0.00028619796, %v958_v2  ;;  %v970_v5 = vadd.f32 0.001143296, %v969_v3  ;;  %v1979_v2 = vld [vmem:[%s2469_s1 + $0x1] ss:$0 sm:$0xff] }
 0x725   : > { %v960_v9 = vmul.f32 %v959_v4, %v957_v62  ;;  %v971_v10 = vmul.f32 %v970_v5, %v957_v62  ;;  %v1980_v5 = vld [vmem:[%s2470_s2 + $0x1] ss:$0 sm:$0xff] }
 0x727   : > { %v972_v11 = vadd.f32 0.014752088, %v971_v10  ;;  %v961_v12 = vadd.f32 0.0036580483, %v960_v9 }
 0x729   : > { %v973_v14 = vmul.f32 %v972_v11, %v957_v62  ;;  %v962_v16 = vmul.f32 %v961_v12, %v957_v62  ;;  %v1981_v11 = vld [vmem:[%s2472_s4 + $0x1] ss:$0 sm:$0xff] }
 0x72b   : > { %v974_v15 = vadd.f32 0.112945676, %v973_v14  ;;  %v963_v20 = vadd.f32 0.05243302, %v962_v16 }
 0x72d   : > { %v975_v18 = vmul.f32 %v974_v15, %v957_v62  ;;  %v964_v23 = vmul.f32 %v963_v20, %v957_v62 }
 0x72f   : > { %v976_v19 = vadd.f32 0.4994258, %v975_v18  ;;  %v965_v24 = vadd.f32 0.18741608, %v964_v23 }
 0x731   : > { %v977_v21 = vmul.f32 %v976_v19, %v957_v62  ;;  %v966_v26 = vmul.f32 %v965_v24, %v957_v62 }
 0x733   : > { %v978_v22 = vadd.f32 1.0, %v977_v21  ;;  %v967_v31 = vadd.f32 1.1283791, %v966_v26 }
 0x735   : > { %2011 = vrcp.f32 %v978_v22  ;;  %v990_v30 = vand.u32 2147483648, %v978_v22  ;;  %v988_v33 = vand.u32 2147483647, %v978_v22  ;;  %vm984_vm14 = vweird.f32 %v978_v22 }
 0x736   : > { %v968_v36 = vmul.f32 %v967_v31, %v955_v59 }
 0x737   : > { %v991_v35 = vor.u32 1.1754944e-38, %v990_v30  ;;  %vm989_vm1 = vcmp.eq.f32.partialorder %v988_v33, 8.507059e+37 }
 0x73b   : > { %v2012_v25 = vpop.eup %2011 }
 0x73c   : > { %v980_v27 = vmul.f32 %v2012_v25, %v978_v22  ;;  %vm985_vm13 = vweird.f32 %v2012_v25 }
 0x73d   : > { %vm986_vm15 = vmor %vm984_vm14, %vm985_vm13 }
 0x73e   : > { %v981_v29 = vsub.f32 1.0, %v980_v27 }
 0x740   : > { %v982_v32 = vmul.f32 %v2012_v25, %v981_v29 }
 0x742   : > { %v983_v34 = vadd.f32 %v2012_v25, %v982_v32 }
 0x744   : > { %v987_v0 = vsel %vm986_vm15, %v2012_v25, %v983_v34 }
 0x745   : > { %v992_v37 = vsel %vm989_vm1, %v991_v35, %v987_v0 }
 0x746   : > { %v993_v38 = vmul.f32 %v992_v37, %v968_v36 }
 0x748   : > { %v1787_v40 = vclamps-f32 %v993_v38, 1.0 }
 0x74a   : > { %v996_v42 = vadd.f32 1.0, %v1787_v40 }
 0x74c   : > { %v997_v43 = vmul.f32 %v996_v42, %v954_v41 }
 0x74e   : > { %v998_v44 = vpack.c.bf16 %v997_v43, %v997_v43 }
 0x750   : > { %1075 = vmatmul.bf16.vlgmr.msra.gmra.mxu3 %v998_v44 }
 0x7d3   : > { %v1076_v46 = vpop.f32.mrf.mxu3 }
 0x7d4   : > { %v1077_v47 = vadd.f32 %v1978_v45, %v1076_v46 }
 0x7d6   : > { %v2302_v48 = vadd.f32 %v1077_v47, %v2250_v28  ;;  %v1940_v28 = vld [vmem:[%s2471_s3 + $0x10] sm:$0xff] }
 0x7d7   : > { %1148 = vmatpush.bf16.msra.mxu0 %v1940_v28 }
 0x7d8   : > { %v1085_v39 = vsel %vm497_vm0, %v2302_v48, 0.0 }
 0x7d9   : > { %1086 = vadd.xlane.f32.xlu0 %v1085_v39 }
 0x7db   : > { %v1078_v51 = vpop.f32.mrf.mxu3 }
 0x84c   : > { %v1087_v52 = vpop.xlane.xlu0 %1086 }
 0x84d   : > { %v1088_v53 = vmul.f32 %v1087_v52, %v2152_v8 }
 0x84f   : > { %v1089_v54 = vsub.f32 %v2302_v48, %v1088_v53 }
 0x851   : > { %v1090_v55 = vmul.f32 %v1089_v54, %v1089_v54 }
 0x853   : > { %v1091_v56 = vsel %vm497_vm0, %v1090_v55, 0.0 }
 0x854   : > { %1092 = vadd.xlane.f32.xlu0 %v1091_v56 }
 0x8c7   : > { %v1093_v58 = vpop.xlane.xlu0 %1092 }
 0x8c8   : > { %v1094_v49 = vmul.f32 %v1093_v58, %v2152_v8 }
 0x8ca   : > { %v1095_v50 = vadd.f32 1e-05, %v1094_v49 }
 0x8cc   : > { %2013 = vrsqrt.f32 %v1095_v50  ;;  %vm1102_vm3 = vweird.f32 %v1095_v50 }
 0x8d2   : > { %v2014_v59 = vpop.eup %2013 }
 0x8d3   : > { %v1097_v60 = vmul.f32 %v2014_v59, %v1095_v50  ;;  %vm1103_vm2 = vweird.f32 %v2014_v59 }
 0x8d4   : > { %vm1104_vm4 = vmor %vm1102_vm3, %vm1103_vm2 }
 0x8d5   : > { %v1098_v61 = vmul.f32 %v2014_v59, %v1097_v60 }
 0x8d7   : > { %v1099_v62 = vmul.f32 0.5, %v1098_v61 }
 0x8d9   : > { %v1100_v63 = vsub.f32 1.5, %v1099_v62 }
 0x8db   : > { %v1101_v1 = vmul.f32 %v2014_v59, %v1100_v63 }
 0x8dd   : > { %v1105_v3 = vsel %vm1104_vm4, %v2014_v59, %v1101_v1 }
 0x8de   : > { %v1106_v4 = vmul.f32 %v1105_v3, %v1089_v54 }
 0x8e0   : > { %v1110_v6 = vmul.f32 %v1979_v2, %v1106_v4 }
 0x8e2   : > { %v1114_v9 = vadd.f32 %v1980_v5, %v1110_v6 }
 0x8e4   : > { %v1115_v10 = vpack.c.bf16 %v1114_v9, %v1114_v9 }
 0x8e6   : > { %1835 = vmatmul.msk.bf16.vlgmr.msra.gmra.mxu0 %vm497_vm0, %v1115_v10 }
 0x963   : > { %v1150_v12 = vpop.f32.mrf.mxu0 }
 0x964   : > { %v1151_v13 = vadd.f32 %v1981_v11, %v1150_v12 }
 0x966   : > { %1161 = vrot.lane.b32.xlu1 %v1151_v13, %s2046_s21  ;;  %1158 = vrot.lane.b32.xlu2 %v1151_v13, %s2048_s23  ;;  %v1172_v14 = vpack.c.bf16 %v1151_v13, %v1151_v13  ;;  %v1164_v33 = vmul.f32 0.35355338, %v1151_v13  ;;  %s2489_s21 = smov 16   ;;  %s2491_s23 = smov 24  }
 0x967   : > { %1155 = vrot.lane.b32.xlu0 %v1151_v13, %s2047_s22  ;;  %s2490_s22 = smov 8  }
 0x968   : > { %v1177_v15 = vunpack.c.l.b16 %v1172_v14  ;;  %v1168_v34 = vpack.c.bf16 %v1164_v33, %v1164_v33 }
 0x96a   : > { %v2329_v17 = vpack.c.b16 %v1177_v15, %v1177_v15 }
 0x96b   : > { %v1152_v16 = vpop.f32.mrf.mxu0 }
 0x96f   : > { %1179 = vrot.lane.b32.xlu0 %v2329_v17, %s2049_s24 }
 0x9c0   : > { %v1159_v18 = vpop.permute.xlu2 %1158 }
 0x9c1   : > { %v1174_v19 = vpack.c.bf16 %v1159_v18, %v1159_v18  ;;  %v1166_v0 = vmul.f32 0.35355338, %v1159_v18 }
 0x9c3   : > { %v1225_v20 = vunpack.c.l.b16 %v1174_v19  ;;  %v1170_v37 = vpack.c.bf16 %v1166_v0, %v1166_v0 }
 0x9c5   : > { %v1226_v21 = vpack.c.b16 %v1225_v20, %v1225_v20 }
 0x9c7   : > { %1227 = vrot.lane.b32.xlu2 %v1226_v21, %s2049_s24 }
 0x9d8   : > { %v1162_v22 = vpop.permute.xlu1 %1161 }
 0x9d9   : > { %v1175_v23 = vpack.c.bf16 %v1162_v22, %v1162_v22  ;;  %v1156_v24 = vpop.permute.xlu0 %1155  ;;  %v1167_v43 = vmul.f32 0.35355338, %v1162_v22 }
 0x9da   : > { %v1173_v25 = vpack.c.bf16 %v1156_v24, %v1156_v24  ;;  %v1165_v44 = vmul.f32 0.35355338, %v1156_v24 }
 0x9db   : > { %v1249_v26 = vunpack.c.l.b16 %v1175_v23  ;;  %v1171_v45 = vpack.c.bf16 %v1167_v43, %v1167_v43 }
 0x9dc   : > { %v1201_v27 = vunpack.c.l.b16 %v1173_v25  ;;  %v1169_v46 = vpack.c.bf16 %v1165_v44, %v1165_v44 }
 0x9dd   : > { %v2334_v29 = vpack.c.b16 %v1249_v26, %v1249_v26 }
 0x9de   : > { %v2336_v30 = vpack.c.b16 %v1201_v27, %v1201_v27 }
 0x9df   : > { %1251 = vrot.lane.b32.xlu1 %v2334_v29, %s2049_s24 }
 0x9e0   : > { %1203 = vrot.lane.b32.xlu0 %v2336_v30, %s2049_s24 }
 0x9e1   : > { %v1180_v31 = vpop.permute.xlu0 %1179 }
 0x9e2   : > { %v1185_v32 = vsel %vm599_vm5, %v1180_v31, 0 }
 0x9e3   : > { %1194 = vmatpush.bf16.xpose.msra.mxu1 %v1185_v32 }
 0x9ea   : > { %1836 = vmatmul.msk.bf16.vlgmr.msra.gmra.mxu1 %vm599_vm5, %v1168_v34 }
 0xa21   : > { %v1228_v35 = vpop.permute.xlu2 %1227 }
 0xa22   : > { %v1233_v36 = vsel %vm599_vm5, %v1228_v35, 0 }
 0xa23   : > { %1242 = vmatpush.bf16.xpose.msrb.mxu0 %v1233_v36 }
 0xa2a   : > { %1838 = vmatmul.msk.bf16.vlgmr.msrb.gmra.mxu0 %vm599_vm5, %v1170_v37 }
 0xa51   : > { %v1252_v38 = vpop.permute.xlu1 %1251 }
 0xa52   : > { %v1257_v40 = vsel %vm599_vm5, %v1252_v38, 0  ;;  %v1204_v41 = vpop.permute.xlu0 %1203 }
 0xa53   : > { %v1209_v42 = vsel %vm599_vm5, %v1204_v41, 0  ;;  %1266 = vmatpush.bf16.xpose.msrb.mxu1 %v1257_v40 }
 0xa54   : > { %1218 = vmatpush.bf16.xpose.msrb.mxu2 %v1209_v42 }
 0xa5a   : > { %1839 = vmatmul.msk.bf16.vlgmr.msrb.gmra.mxu1 %vm599_vm5, %v1171_v45 }
 0xa5b   : > { %1837 = vmatmul.msk.bf16.vlgmr.msrb.gmra.mxu2 %vm599_vm5, %v1169_v46 }
 0xa67   : > { %v1196_v47 = vpop.f32.mrf.mxu1 }
 0xa68   : > { %v1272_v59 = vsel %vm2198_vm6, %v1196_v47, -1e+30 }
 0xa69   : > { %v1276_v61 = vsel %vm599_vm5, %v1272_v59, -inf }
 0xa6f   : > { %v1198_v39 = vpop.f32.mrf.mxu1 }
 0xaa7   : > { %v1244_v51 = vpop.f32.mrf.mxu0 }
 0xaa8   : > { %v1274_v52 = vsel %vm2198_vm6, %v1244_v51, -1e+30 }
 0xaa9   : > { %v1282_v53 = vsel %vm599_vm5, %v1274_v52, -inf }
 0xaaa   : > { %1283 = vmax.xlane.f32.xlu2 %v1282_v53 }
 0xaaf   : > { %v1246_v54 = vpop.f32.mrf.mxu0 }
 0xad7   : > { %v1268_v55 = vpop.f32.mrf.mxu1 }
 0xad8   : > { %v1275_v56 = vsel %vm2198_vm6, %v1268_v55, -1e+30  ;;  %v1943_v55 = vld [vmem:[%s2473_s5 + $0x18] sm:$0xff] }
 0xad9   : > { %v1285_v57 = vsel %vm599_vm5, %v1275_v56, -inf }
 0xada   : > { %1286 = vmax.xlane.f32.xlu1 %v1285_v57 }
 0xade   : > { %v1220_v28 = vpop.f32.mrf.mxu2 }
 0xadf   : > { %v1273_v58 = vsel %vm2198_vm6, %v1220_v28, -1e+30  ;;  %v1270_v49 = vpop.f32.mrf.mxu1 }
 0xae0   : > { %v1279_v50 = vsel %vm599_vm5, %v1273_v58, -inf }
 0xae1   : > { %1280 = vmax.xlane.f32.xlu0 %v1279_v50 }
 0xae6   : > { %v1222_v60 = vpop.f32.mrf.mxu2 }
 0xae9   : > { %1277 = vmax.xlane.f32.xlu0 %v1276_v61  ;;  %v1982_v61 = vld [vmem:[%s2474_s6 + $0x1] ss:$0 sm:$0xff] }
 0xb1d   : > { %v1284_v62 = vpop.xlane.xlu2 %1283 }
 0xb1e   : > { %v1290_v63 = vsub.f32 %v1274_v52, %v1284_v62 }
 0xb20   : > { %v1296_v1 = vmul.f32 1.442695, %v1290_v63 }
 0xb22   : > { %2015 = vpow2.f32 %v1296_v1 }
 0xb28   : > { %v2016_v2 = vpop.eup %2015 }
 0xb29   : > { %v1306_v3 = vsel %vm599_vm5, %v2016_v2, 0.0 }
 0xb2a   : > { %1307 = vadd.xlane.f32.xlu1 %v1306_v3 }
 0xb43   : > { %1366 = vrot.lane.b32.xlu1 %v1226_v21, %s2050_s25 }
 0xb4d   : > { %v1287_v4 = vpop.xlane.xlu1 %1286 }
 0xb4e   : > { %v1291_v5 = vsub.f32 %v1275_v56, %v1287_v4  ;;  %v1942_v56 = vld [vmem:[%s2473_s5 + $0x10] sm:$0xff] }
 0xb50   : > { %v1298_v6 = vmul.f32 1.442695, %v1291_v5 }
 0xb52   : > { %2017 = vpow2.f32 %v1298_v6 }
 0xb54   : > { %v1281_v7 = vpop.xlane.xlu0 %1280 }
 0xb55   : > { %v1289_v9 = vsub.f32 %v1273_v58, %v1281_v7 }
 0xb57   : > { %v1294_v10 = vmul.f32 1.442695, %v1289_v9 }
 0xb58   : > { %v2018_v11 = vpop.eup %2017 }
 0xb59   : > { %2019 = vpow2.f32 %v1294_v10  ;;  %v1309_v12 = vsel %vm599_vm5, %v2018_v11, 0.0  ;;  %v1945_v10 = vld [vmem:[%s2477_s9 + $0x18] sm:$0xff] }
 0xb5a   : > { %1310 = vadd.xlane.f32.xlu0 %v1309_v12 }
 0xb5c   : > { %v1278_v15 = vpop.xlane.xlu0 %1277 }
 0xb5d   : > { %v1288_v16 = vsub.f32 %v1272_v59, %v1278_v15 }
 0xb5f   : > { %v2020_v13 = vpop.eup %2019  ;;  %v1292_v18 = vmul.f32 1.442695, %v1288_v16 }
 0xb60   : > { %v1303_v14 = vsel %vm599_vm5, %v2020_v13, 0.0 }
 0xb61   : > { %1304 = vadd.xlane.f32.xlu2 %v1303_v14  ;;  %2021 = vpow2.f32 %v1292_v18 }
 0xb67   : > { %v2022_v19 = vpop.eup %2021 }
 0xb68   : > { %v1300_v20 = vsel %vm599_vm5, %v2022_v19, 0.0 }
 0xb6e   : > { %1387 = vrot.lane.b32.xlu0 %v2334_v29, %s2050_s25 }
 0xb76   : > { %1324 = vrot.lane.b32.xlu0 %v2329_v17, %s2050_s25 }
 0xb79   : > { %1345 = vrot.lane.b32.xlu2 %v2336_v30, %s2050_s25  ;;  %s487_s25 = scalar_lea.vmem %s2483_s15, %s2493_s19 }
 0xb9d   : > { %v1308_v21 = vpop.xlane.xlu1 %1307 }
 0xb9e   : > { %2023 = vrcp.f32 %v1308_v21  ;;  %v1983_v21 = vld [vmem:[%s2475_s7 + $0x1] ss:$0 sm:$0xff] }
 0xba2   : > { %1301 = vadd.xlane.f32.xlu2 %v1300_v20 }
 0xba4   : > { %v2024_v22 = vpop.eup %2023 }
 0xba5   : > { %v1318_v23 = vmul.f32 %v2024_v22, %v2016_v2 }
 0xba7   : > { %v1322_v17 = vpack.c.bf16 %v1318_v23, %v1318_v23 }
 0xbb5   : > { %v1367_v24 = vpop.permute.xlu1 %1366 }
 0xbb6   : > { %v1372_v25 = vsel %vm750_vm7, %v1367_v24, 0  ;;  %v1984_v24 = vld [vmem:[%s2476_s8 + $0x1] ss:$0 sm:$0xff] }
 0xbb7   : > { %1381 = vmatpush.bf16.msra.mxu0 %v1372_v25 }
 0xbba   : > { %1842 = vmatmul.msk.bf16.vlgmr.msra.gmra.mxu0 %vm599_vm5, %v1322_v17 }
 0xbcd   : > { %v1311_v26 = vpop.xlane.xlu0 %1310 }
 0xbd4   : > { %v1305_v27 = vpop.xlane.xlu2 %1304 }
 0xbd5   : > { %2025 = vrcp.f32 %v1305_v27  ;;  %v1953_v27 = vld [vmem:[%s2479_s11 + $0x78] sm:$0xff] }
 0xbd6   : > { %2027 = vrcp.f32 %v1311_v26  ;;  %1651 = vmatpush.bf16.msrb.mxu0 %v1953_v27 }
 0xbdb   : > { %v2026_v29 = vpop.eup %2025 }
 0xbdc   : > { %v2028_v30 = vpop.eup %2027  ;;  %v1317_v31 = vmul.f32 %v2026_v29, %v2020_v13  ;;  %v1346_v32 = vpop.permute.xlu2 %1345  ;;  %v1952_v29 = vld [vmem:[%s2479_s11 + $0x70] sm:$0xff] }
 0xbdd   : > { %v1351_v33 = vsel %vm750_vm7, %v1346_v32, 0  ;;  %v1319_v35 = vmul.f32 %v2028_v30, %v2018_v11  ;;  %v1985_v30 = vld [vmem:[%s2478_s10 + $0x1] ss:$0 sm:$0xff]  ;;  %1652 = vmatpush.bf16.msrb.mxu0 %v1952_v29  ;;  %v1951_v32 = vld [vmem:[%s2479_s11 + $0x68] sm:$0xff] }
 0xbde   : > { %v1321_v34 = vpack.c.bf16 %v1317_v31, %v1317_v31  ;;  %1360 = vmatpush.bf16.msrb.mxu3 %v1351_v33 }
 0xbdf   : > { %v1323_v37 = vpack.c.bf16 %v1319_v35, %v1319_v35  ;;  %v1950_v35 = vld [vmem:[%s2479_s11 + $0x60] sm:$0xff] }
 0xbe0   : > { %v1388_v36 = vpop.permute.xlu0 %1387 }
 0xbe1   : > { %1841 = vmatmul.msk.bf16.vlgmr.msrb.gmra.mxu3 %vm599_vm5, %v1321_v34  ;;  %v1393_v0 = vsel %vm750_vm7, %v1388_v36, 0  ;;  %1653 = vmatpush.bf16.msrb.mxu0 %v1951_v32 }
 0xbe2   : > { %1402 = vmatpush.bf16.msra.mxu1 %v1393_v0  ;;  %1529 = vmatpush.bf16.msra.mxu3 %v1945_v10 }
 0xbe5   : > { %1843 = vmatmul.msk.bf16.vlgmr.msra.gmra.mxu1 %vm599_vm5, %v1323_v37  ;;  %1654 = vmatpush.bf16.msrb.mxu0 %v1950_v35 }
 0xbe8   : > { %v1325_v38 = vpop.permute.xlu0 %1324 }
 0xbe9   : > { %v1330_v40 = vsel %vm750_vm7, %v1325_v38, 0  ;;  %v1949_v38 = vld [vmem:[%s2479_s11 + $0x58] sm:$0xff] }
 0xbea   : > { %1339 = vmatpush.bf16.msra.mxu2 %v1330_v40  ;;  %1655 = vmatpush.bf16.msrb.mxu0 %v1949_v38 }
 0xbee   : > { %1455 = vmatpush.bf16.msrb.mxu2 %v1943_v55  ;;  %v1946_v55 = vld [vmem:[%s2479_s11 + $0x40] sm:$0xff] }
 0xbf2   : > { %1456 = vmatpush.bf16.msrb.mxu2 %v1942_v56 }
 0xc15   : > { %v1302_v41 = vpop.xlane.xlu2 %1301 }
 0xc16   : > { %2029 = vrcp.f32 %v1302_v41 }
 0xc1c   : > { %v2030_v42 = vpop.eup %2029 }
 0xc1d   : > { %v1316_v43 = vmul.f32 %v2030_v42, %v2022_v19 }
 0xc1f   : > { %v1320_v44 = vpack.c.bf16 %v1316_v43, %v1316_v43 }
 0xc21   : > { %1840 = vmatmul.msk.bf16.vlgmr.msra.gmra.mxu2 %vm599_vm5, %v1320_v44  ;;  %v1948_v44 = vld [vmem:[%s2479_s11 + $0x50] sm:$0xff] }
 0xc22   : > { %1656 = vmatpush.bf16.msrb.mxu0 %v1948_v44 }
 0xc37   : > { %v1383_v45 = vpop.f32.mrf.mxu0 }
 0xc38   : > { %1413 = vrot.lane.b32.xlu0 %v1383_v45, %s2489_s21 }
 0xc3f   : > { %v1385_v46 = vpop.f32.mrf.mxu0 }
 0xc62   : > { %v1404_v47 = vpop.f32.mrf.mxu1 }
 0xc64   : > { %v1362_v39 = vpop.f32.mrf.mxu3 }
 0xc65   : > { %1409 = vrot.lane.b32.xlu1 %v1362_v39, %s2490_s22 }
 0xc6a   : > { %v1406_v51 = vpop.f32.mrf.mxu1 }
 0xc6b   : > { %v1947_v51 = vld [vmem:[%s2479_s11 + $0x48] sm:$0xff] }
 0xc6c   : > { %v1364_v52 = vpop.f32.mrf.mxu3  ;;  %1657 = vmatpush.bf16.msrb.mxu0 %v1947_v51 }
 0xc6d   : > { %1417 = vrot.lane.b32.xlu1 %v1404_v47, %s2491_s23 }
 0xc70   : > { %1658 = vmatpush.bf16.msrb.mxu0 %v1946_v55 }
 0xca4   : > { %v1341_v53 = vpop.f32.mrf.mxu2 }
 0xcaa   : > { %v1414_v58 = vpop.permute.xlu0 %1413 }
 0xcac   : > { %v1343_v54 = vpop.f32.mrf.mxu2 }
 0xcd7   : > { %v1410_v57 = vpop.permute.xlu1 %1409 }
 0xcd8   : > { %v1420_v28 = vsel %vm599_vm5, %v1341_v53, %v1410_v57 }
 0xcd9   : > { %v1421_v49 = vsel %vm843_vm8, %v1420_v28, %v1414_v58 }
 0xcdf   : > { %v1418_v50 = vpop.permute.xlu1 %1417 }
 0xce0   : > { %v1422_v59 = vsel %vm845_vm9, %v1421_v49, %v1418_v50 }
 0xce1   : > { %v1423_v60 = vpack.c.bf16 %v1422_v59, %v1422_v59 }
 0xce3   : > { %1857 = vmatmul.msk.bf16.vlgmr.msrb.gmra.mxu2 %vm497_vm0, %v1423_v60 }
 0xd66   : > { %v1458_v62 = vpop.f32.mrf.mxu2 }
 0xd67   : > { %v1459_v63 = vadd.f32 %v1982_v61, %v1458_v62 }
 0xd69   : > { %v2398_v1 = vadd.f32 %v1459_v63, %v2302_v48  ;;  %v1944_v48 = vld [vmem:[%s2477_s9 + $0x10] sm:$0xff] }
 0xd6a   : > { %1530 = vmatpush.bf16.msra.mxu3 %v1944_v48 }
 0xd6b   : > { %v1467_v2 = vsel %vm497_vm0, %v2398_v1, 0.0 }
 0xd6c   : > { %1468 = vadd.xlane.f32.xlu0 %v1467_v2 }
 0xd6e   : > { %v1460_v3 = vpop.f32.mrf.mxu2 }
 0xddf   : > { %v1469_v4 = vpop.xlane.xlu0 %1468 }
 0xde0   : > { %v1470_v5 = vmul.f32 %v1469_v4, %v2152_v8 }
 0xde2   : > { %v1471_v6 = vsub.f32 %v2398_v1, %v1470_v5 }
 0xde4   : > { %v1472_v7 = vmul.f32 %v1471_v6, %v1471_v6 }
 0xde6   : > { %v1473_v9 = vsel %vm497_vm0, %v1472_v7, 0.0 }
 0xde7   : > { %1474 = vadd.xlane.f32.xlu1 %v1473_v9 }
 0xe5a   : > { %v1475_v11 = vpop.xlane.xlu1 %1474 }
 0xe5b   : > { %v1476_v12 = vmul.f32 %v1475_v11, %v2152_v8 }
 0xe5d   : > { %v1477_v13 = vadd.f32 1e-05, %v1476_v12 }
 0xe5f   : > { %2031 = vrsqrt.f32 %v1477_v13  ;;  %vm1484_vm6 = vweird.f32 %v1477_v13 }
 0xe65   : > { %v2032_v14 = vpop.eup %2031 }
 0xe66   : > { %v1479_v15 = vmul.f32 %v2032_v14, %v1477_v13  ;;  %vm1485_vm5 = vweird.f32 %v2032_v14 }
 0xe67   : > { %vm1486_vm7 = vmor %vm1484_vm6, %vm1485_vm5 }
 0xe68   : > { %v1480_v16 = vmul.f32 %v2032_v14, %v1479_v15 }
 0xe6a   : > { %v1481_v18 = vmul.f32 0.5, %v1480_v16 }
 0xe6c   : > { %v1482_v19 = vsub.f32 1.5, %v1481_v18  ;;  %v1986_v18 = vld [vmem:[%s2480_s12 + $0x1] ss:$0 sm:$0xff] }
 0xe6e   : > { %v1483_v20 = vmul.f32 %v2032_v14, %v1482_v19 }
 0xe70   : > { %v1487_v22 = vsel %vm1486_vm7, %v2032_v14, %v1483_v20 }
 0xe71   : > { %v1488_v23 = vmul.f32 %v1487_v22, %v1471_v6 }
 0xe73   : > { %v1492_v25 = vmul.f32 %v1983_v21, %v1488_v23 }
 0xe75   : > { %v1496_v17 = vadd.f32 %v1984_v24, %v1492_v25 }
 0xe77   : > { %v1497_v26 = vpack.c.bf16 %v1496_v17, %v1496_v17 }
 0xe79   : > { %1873 = vmatmul.msk.bf16.vlgmr.msra.gmra.mxu3 %vm497_vm0, %v1497_v26 }
 0xefc   : > { %v1532_v31 = vpop.f32.mrf.mxu3 }
 0xefd   : > { %v1533_v33 = vadd.f32 %v1985_v30, %v1532_v31 }
 0xeff   : > { %v1537_v34 = vmul.f32 0.70710677, %v1533_v33  ;;  %v1536_v13 = vmul.f32 0.5, %v1533_v33 }
 0xf01   : > { %v1538_v36 = vmul.f32 %v1537_v34, %v1537_v34 }
 0xf03   : > { %v1539_v0 = vmin.f32 %v1538_v36, 16.0 }
 0xf04   : > { %v1534_v37 = vpop.f32.mrf.mxu3 }
 0xf05   : > { %v1540_v40 = vmul.f32 2.1237322e-06, %v1539_v0  ;;  %v1551_v41 = vmul.f32 3.8918573e-05, %v1539_v0 }
 0xf07   : > { %v1541_v42 = vadd.f32 0.00028619796, %v1540_v40  ;;  %v1552_v43 = vadd.f32 0.001143296, %v1551_v41 }
 0xf09   : > { %v1542_v45 = vmul.f32 %v1541_v42, %v1539_v0  ;;  %v1553_v46 = vmul.f32 %v1552_v43, %v1539_v0 }
 0xf0b   : > { %v1554_v47 = vadd.f32 0.014752088, %v1553_v46  ;;  %v1543_v39 = vadd.f32 0.0036580483, %v1542_v45 }
 0xf0d   : > { %v1555_v52 = vmul.f32 %v1554_v47, %v1539_v0  ;;  %v1544_v54 = vmul.f32 %v1543_v39, %v1539_v0 }
 0xf0f   : > { %v1556_v53 = vadd.f32 0.112945676, %v1555_v52  ;;  %v1545_v28 = vadd.f32 0.05243302, %v1544_v54 }
 0xf11   : > { %v1557_v56 = vmul.f32 %v1556_v53, %v1539_v0  ;;  %v1546_v50 = vmul.f32 %v1545_v28, %v1539_v0 }
 0xf13   : > { %v1558_v57 = vadd.f32 0.4994258, %v1557_v56  ;;  %v1547_v59 = vadd.f32 0.18741608, %v1546_v50 }
 0xf15   : > { %v1559_v58 = vmul.f32 %v1558_v57, %v1539_v0  ;;  %v1548_v61 = vmul.f32 %v1547_v59, %v1539_v0  ;;  %v1987_v0 = vld [vmem:[%s2481_s13] ss:$0 sm:$0xff] }
 0xf17   : > { %v1560_v49 = vadd.f32 1.0, %v1559_v58  ;;  %v1549_v3 = vadd.f32 1.1283791, %v1548_v61 }
 0xf19   : > { %2033 = vrcp.f32 %v1560_v49  ;;  %v1572_v2 = vand.u32 2147483648, %v1560_v49  ;;  %v1570_v5 = vand.u32 2147483647, %v1560_v49  ;;  %vm1566_vm8 = vweird.f32 %v1560_v49 }
 0xf1a   : > { %v1550_v9 = vmul.f32 %v1549_v3, %v1537_v34 }
 0xf1b   : > { %v1573_v7 = vor.u32 1.1754944e-38, %v1572_v2  ;;  %vm1571_vm10 = vcmp.eq.f32.partialorder %v1570_v5, 8.507059e+37 }
 0xf1f   : > { %v2034_v60 = vpop.eup %2033 }
 0xf20   : > { %v1562_v62 = vmul.f32 %v2034_v60, %v1560_v49  ;;  %vm1567_vm0 = vweird.f32 %v2034_v60 }
 0xf21   : > { %vm1568_vm9 = vmor %vm1566_vm8, %vm1567_vm0 }
 0xf22   : > { %v1563_v63 = vsub.f32 1.0, %v1562_v62 }
 0xf24   : > { %v1564_v4 = vmul.f32 %v2034_v60, %v1563_v63 }
 0xf26   : > { %v1565_v6 = vadd.f32 %v2034_v60, %v1564_v4 }
 0xf28   : > { %v1569_v10 = vsel %vm1568_vm9, %v2034_v60, %v1565_v6 }
 0xf29   : > { %v1574_v48 = vsel %vm1571_vm10, %v1573_v7, %v1569_v10 }
 0xf2a   : > { %v1575_v11 = vmul.f32 %v1574_v48, %v1550_v9 }
 0xf2c   : > { %v1874_v12 = vclamps-f32 %v1575_v11, 1.0 }
 0xf2e   : > { %v1578_v14 = vadd.f32 1.0, %v1874_v12 }
 0xf30   : > { %v1579_v15 = vmul.f32 %v1578_v14, %v1536_v13 }
 0xf32   : > { %v1580_v16 = vpack.c.bf16 %v1579_v15, %v1579_v15 }
 0xf34   : > { %1659 = vmatmul.bf16.vlgmr.msrb.gmra.mxu0 %v1580_v16 }
 0xfb1   : > { %v1660_v19 = vpop.f32.mrf.mxu0 }
 0xfb2   : > { %v1661_v20 = vadd.f32 %v1986_v18, %v1660_v19 }
 0xfb4   : > { %v1664_v21 = vadd.f32 %v1661_v20, %v2398_v1 }
 0xfb6   : > { %v1668_v22 = vsel %vm1667_vm11, %v1664_v21, 0.0 }
 0xfb7   : > { %1669 = vadd.xlane.f32.xlu2 %v1668_v22 }
 0xfb9   : > { %v1662_v23 = vpop.f32.mrf.mxu0 }
0x102a   : > { %v1670_v24 = vpop.xlane.xlu2 %1669 }
0x102b   : > { %v1671_v25 = vmul.f32 %v1670_v24, %v2152_v8 }
0x102d   : > { %v1672_v17 = vsub.f32 %v1664_v21, %v1671_v25 }
0x102f   : > { %v1673_v26 = vmul.f32 %v1672_v17, %v1672_v17 }
0x1031   : > { %v1674_v27 = vsel %vm1667_vm11, %v1673_v26, 0.0 }
0x1032   : > { %1675 = vadd.xlane.f32.xlu2 %v1674_v27 }
0x10a5   : > { %v1676_v29 = vpop.xlane.xlu2 %1675 }
0x10a6   : > { %v1677_v30 = vmul.f32 %v1676_v29, %v2152_v8  ;;  %v1988_v8 = vld [vmem:[%s2482_s14] ss:$0 sm:$0xff] }
0x10a8   : > { %v1678_v31 = vadd.f32 1e-05, %v1677_v30 }
0x10aa   : > { %2035 = vrsqrt.f32 %v1678_v31  ;;  %vm1685_vm13 = vweird.f32 %v1678_v31 }
0x10b0   : > { %v2036_v32 = vpop.eup %2035 }
0x10b1   : > { %v1680_v1 = vmul.f32 %v2036_v32, %v1678_v31  ;;  %vm1686_vm12 = vweird.f32 %v2036_v32 }
0x10b2   : > { %vm1687_vm14 = vmor %vm1685_vm13, %vm1686_vm12 }
0x10b3   : > { %v1681_v33 = vmul.f32 %v2036_v32, %v1680_v1 }
0x10b5   : > { %v1682_v34 = vmul.f32 0.5, %v1681_v33 }
0x10b7   : > { %v1683_v35 = vsub.f32 1.5, %v1682_v34 }
0x10b9   : > { %v1684_v36 = vmul.f32 %v2036_v32, %v1683_v35 }
0x10bb   : > { %v1688_v37 = vsel %vm1687_vm14, %v2036_v32, %v1684_v36 }
0x10bc   : > { %v1689_v38 = vmul.f32 %v1688_v37, %v1672_v17 }
0x10be   : > { %v1693_v40 = vmul.f32 %v1987_v0, %v1689_v38 }
0x10c0   : > { %v1697_v41 = vadd.f32 %v1988_v8, %v1693_v40 }
0x10c2   : > { %1698 = vst.msk [vmem:[%s487_s25 - $0x7] sm:$0x80] %vm1667_vm11, %v1697_v41 }
0x10c3 PF: > { %s25_s18 = sadd.s32 1, %s2043_s18  }
0x10c4   : > { %p22_p4 = scmp.ge.s32.totalorder %s25_s18, 4  }
0x10c6   :  { %24 = sbr.rel (!%p22_p4) target bundleno = 1 (0x1), region = 122 }

</bundles_post_ra>
